<compile_context>
chip_gen: v7x
topology: tpu7x:2x2x1
jax: 0.10.0
libtpu: 0.0.40
codegen_flags: <defaults>
</compile_context>

<pallas_src>
import functools
import math

import jax
import jax.numpy as jnp
from jax.experimental import pallas as pl
from jax.experimental.pallas import tpu as pltpu

LN_EPS = 1e-5          # torch.nn.LayerNorm default
BF = jnp.bfloat16
NEG_INF = -1e30


def _layernorm(x, w, b):
    # Reference LayerNorm subclass casts to fp32; we compute in fp32 throughout.
    mu = jnp.mean(x, axis=-1, keepdims=True)
    var = jnp.mean(jnp.square(x - mu), axis=-1, keepdims=True)
    return (x - mu) * jax.lax.rsqrt(var + LN_EPS) * w + b


def _stack_kernel(n_heads, lk_valid,
                  q_ref, k_ref, v_ref,
                  ln1w_ref, ln1b_ref,
                  wq_ref, bq_ref, wk_ref, bk_ref, wv_ref, bv_ref,
                  wo_ref, bo_ref,
                  ln2w_ref, ln2b_ref,
                  w1_ref, b1_ref, w2_ref, b2_ref,
                  o_ref, acc_ref):
    """One layer of the stack for one batch tile.  Grid = (batch_tile, layer)."""
    layer = pl.program_id(1)
    BT, Lq, E = q_ref.shape
    Lk = k_ref.shape[1]
    H = n_heads
    Dh = E // H

    # Load the running activation into the resident f32 carry at the first layer.
    @pl.when(layer == 0)
    def _():
        acc_ref[...] = q_ref[...].reshape(BT * Lq, E).astype(jnp.float32)

    x = acc_ref[...]                                      # (BT*Lq, E) f32 carry

    # ------------- attention branch: x += MHA(ln_1(x), k, v) -------------------
    ln1 = _layernorm(x, ln1w_ref[...], ln1b_ref[...])
    k_bf = k_ref[...].reshape(BT * Lk, E)                 # already bf16 (host cast)
    v_bf = v_ref[...].reshape(BT * Lk, E)

    # Big (BT*L, E) x (E, E) matmuls; bf16 operands, f32 accumulation.
    # 1/sqrt(Dh) is already folded into wq/bq on the host.
    qp = jnp.dot(ln1.astype(BF), wq_ref[...],
                 preferred_element_type=jnp.float32) + bq_ref[...]
    kp = jnp.dot(k_bf, wk_ref[...],
                 preferred_element_type=jnp.float32) + bk_ref[...]
    vp = jnp.dot(v_bf, wv_ref[...],
                 preferred_element_type=jnp.float32) + bv_ref[...]

    qp3 = qp.reshape(BT, Lq, E).astype(BF)
    kp3 = kp.reshape(BT, Lk, E).astype(BF)
    vp3 = vp.reshape(BT, Lk, E).astype(BF)

    if lk_valid < Lk:                                     # static: padded keys present
        key_idx = jax.lax.broadcasted_iota(jnp.int32, (1, 1, Lk), 2)
        key_bias = jnp.where(key_idx < lk_valid, 0.0, NEG_INF)     # (1,1,Lk) f32
    else:
        key_bias = None

    ctx_parts = []
    for h in range(H):                                    # static unroll over heads
        lo = h * Dh
        qh = qp3[:, :, lo:lo + Dh]                        # (BT, Lq, Dh) bf16
        kh = kp3[:, :, lo:lo + Dh]                        # (BT, Lk, Dh) bf16
        vh = vp3[:, :, lo:lo + Dh]
        s = jnp.einsum('bqd,bkd->bqk', qh, kh,
                       preferred_element_type=jnp.float32)          # (BT, Lq, Lk)
        if key_bias is not None:
            s = s + key_bias
        s = s - jnp.max(s, axis=-1, keepdims=True)
        p = jnp.exp(s)
        p = p * pl.reciprocal(jnp.sum(p, axis=-1, keepdims=True), approx=True)
        ctx_parts.append(
            jnp.einsum('bqk,bkd->bqd', p.astype(BF), vh,
                       preferred_element_type=jnp.float32).astype(BF))
    # Concatenate heads along the lane dim -> ONE full-K out-projection matmul.
    ctx = jnp.concatenate(ctx_parts, axis=-1).reshape(BT * Lq, E)
    attn = jnp.dot(ctx, wo_ref[...],
                   preferred_element_type=jnp.float32) + bo_ref[...]
    x = x + attn

    # ------------- MLP branch: x += c_proj(QuickGELU(c_fc(ln_2(x)))) -----------
    # TODO(synk): for very large E on v7x (64 MiB VMEM), tile the 4E FF dim with an
    # extra grid axis / emit_pipeline so only a slice of w1/w2 is resident.
    ln2 = _layernorm(x, ln2w_ref[...], ln2b_ref[...])
    h1 = jnp.dot(ln2.astype(BF), w1_ref[...],
                 preferred_element_type=jnp.float32) + b1_ref[...]
    h1 = h1 * jax.nn.sigmoid(1.702 * h1)                  # QuickGELU (f32)
    m = jnp.dot(h1.astype(BF), w2_ref[...],
                preferred_element_type=jnp.float32) + b2_ref[...]
    x = x + m

    acc_ref[...] = x

    # Only the last layer ever reaches HBM (output block is resident across layers).
    @pl.when(layer == pl.num_programs(1) - 1)
    def _():
        o_ref[...] = x.reshape(BT, Lq, E).astype(o_ref.dtype)


def _pick_batch_tile(n, lq, target_rows=1024, min_tiles=2):
    """Batch elements per grid step: as large as the M-row target allows while
    keeping >= min_tiles grid steps on the parallel axis (megacore on v7x)."""
    bt = max(1, target_rows // max(lq, 1))
    if n >= min_tiles:
        bt = min(bt, -(-n // min_tiles))
    return max(1, min(bt, n))


def _vmem_cap_bytes():
    """Scoped-VMEM ceiling per TPU generation (leave headroom below physical)."""
    try:
        kind = jax.devices()[0].device_kind.lower()
    except Exception:
        kind = ""
    if any(g in kind for g in ("v4", "v5", "v6")):
        return 100 * 1024 * 1024        # 128 MiB physical VMEM
    return 56 * 1024 * 1024             # v7x (64 MiB physical) / unknown


def _vmem_limit_bytes(bt, lq, lk, e, heads, cap):
    """Working-set estimate including all Lk-dependent intermediates."""
    rq, rk = bt * lq, bt * lk
    ff = 4 * e
    blocks = (rq * e + 2 * rk * e) * 2 * 2          # bf16 q/k/v blocks, double-buffered
    blocks += rq * e * 4 * 2                        # output block
    carry = rq * e * 4                              # f32 scratch carry
    weights = (4 * e * e + 2 * e * ff) * 2 * 2      # bf16 wq..wo, w1, w2, double-buffered
    biases = (9 * e + ff) * 4 * 2
    interm = (rq * e + 2 * rk * e) * (4 + 2)        # qp/kp/vp f32 + bf16 copies
    interm += heads * bt * lq * lk * (4 + 2)        # per-head scores/probs f32 + bf16
    interm += rq * e * (4 + 2)                      # ctx f32 + bf16 slab
    interm += rq * ff * (4 + 2)                     # MLP hidden f32 + bf16
    interm += rq * e * 4 * 3                        # LN outputs / residual temporaries
    est = blocks + carry + weights + biases + interm
    return int(min(max(int(1.5 * est), 32 * 1024 * 1024), cap))


_WEIGHT_ORDER = ("ln1_w", "ln1_b", "wq", "bq", "wk", "bk", "wv", "bv",
                 "wo", "bo", "ln2_w", "ln2_b", "w1", "b1", "w2", "b2")


def _run_stack(qb, kb, vb, params, n_heads):
    """qb: (N, Lq, E), kb/vb: (N, Lk, E) -> (N, Lq, E), running all stacked layers."""
    N, Lq, E = qb.shape
    Lk = kb.shape[1]
    out_dtype = qb.dtype
    n_layers = params["wq"].shape[0]

    # ---- sequence-axis padding: Lq to sublane multiple, Lk lane-dense when big ---
    lq_pad = -(-Lq // 8) * 8
    lk_align = 128 if Lk >= 128 else 8
    lk_pad = -(-Lk // lk_align) * lk_align
    if lq_pad != Lq:
        qb = jnp.pad(qb, ((0, 0), (0, lq_pad - Lq), (0, 0)))
    if lk_pad != Lk:
        kb = jnp.pad(kb, ((0, 0), (0, lk_pad - Lk), (0, 0)))
        vb = jnp.pad(vb, ((0, 0), (0, lk_pad - Lk), (0, 0)))

    # ---- batch tiling: pad N to a multiple of bt so awkward N doesn't give bt=1 --
    bt = _pick_batch_tile(N, lq_pad)
    n_pad = -(-N // bt) * bt
    if n_pad != N:
        pad = n_pad - N
        qb = jnp.pad(qb, ((0, pad), (0, 0), (0, 0)))
        kb = jnp.pad(kb, ((0, pad), (0, 0), (0, 0)))
        vb = jnp.pad(vb, ((0, pad), (0, 0), (0, 0)))

    # bf16 inputs: halves q/k/v DMA + VMEM block bytes (f32 carry lives in scratch).
    qb = qb.astype(BF)
    kb = kb.astype(BF)
    vb = vb.astype(BF)

    def act_spec(length):
        return pl.BlockSpec((bt, length, E), lambda b, l: (b, 0, 0))

    def weight_spec(arr):
        nd = arr.ndim
        return pl.BlockSpec((None,) + arr.shape[1:],
                            lambda b, l, _nd=nd: (l,) + (0,) * (_nd - 1))

    weights = [params[name] for name in _WEIGHT_ORDER]
    in_specs = [act_spec(lq_pad), act_spec(lk_pad), act_spec(lk_pad)] + \
               [weight_spec(w) for w in weights]
    out_spec = act_spec(lq_pad)

    kernel = functools.partial(_stack_kernel, n_heads, Lk)
    out = pl.pallas_call(
        kernel,
        out_shape=jax.ShapeDtypeStruct((n_pad, lq_pad, E), out_dtype),
        grid=(n_pad // bt, n_layers),
        in_specs=in_specs,
        out_specs=out_spec,
        scratch_shapes=[pltpu.VMEM((bt * lq_pad, E), jnp.float32)],
        compiler_params=pltpu.CompilerParams(
            dimension_semantics=("parallel", "arbitrary"),
            vmem_limit_bytes=_vmem_limit_bytes(bt, lq_pad, lk_pad, E, n_heads,
                                               _vmem_cap_bytes()),
        ),
    )(qb, kb, vb, *weights)

    if n_pad != N or lq_pad != Lq:
        out = out[:N, :Lq]
    return out


def fully_cross_attention_transformer(q, k, v, params, n_heads, return_inter=False):
    """q: (Lq, N, E), k/v: (Lk, N, E) -> (Lq, N, E) (or stacked per-layer outputs)."""
    # TODO(synk): batch-first callers could skip these transposes (each is a full
    # HBM read+write outside the kernel); kept for parity with the torch layout.
    qb = jnp.transpose(q, (1, 0, 2))
    kb = jnp.transpose(k, (1, 0, 2))
    vb = jnp.transpose(v, (1, 0, 2))
    if return_inter:
        n_layers = params["wq"].shape[0]
        outs = []
        cur = qb
        for l in range(n_layers):
            layer = {name: w[l:l + 1] for name, w in params.items()}
            cur = _run_stack(cur, kb, vb, layer, n_heads)
            outs.append(jnp.transpose(cur, (1, 0, 2)))
        return jnp.stack(outs)
    out = _run_stack(qb, kb, vb, params, n_heads)
    return jnp.transpose(out, (1, 0, 2))


# ----------------------------- parameters -----------------------------------

def init_raw_params(key, width, layers):
    """Synthetic parameters with the exact torch shapes (MultiheadAttention / Linear)."""
    E = width
    raw = []
    for l in range(layers):
        ks = jax.random.split(jax.random.fold_in(key, l), 8)
        raw.append(dict(
            ln1_w=jnp.ones((E,), jnp.float32),
            ln1_b=jnp.zeros((E,), jnp.float32),
            in_w=jax.random.normal(ks[0], (3 * E, E), jnp.float32) * 0.02,
            in_b=jax.random.normal(ks[1], (3 * E,), jnp.float32) * 0.02,
            out_w=jax.random.normal(ks[2], (E, E), jnp.float32) * 0.02,
            out_b=jax.random.normal(ks[3], (E,), jnp.float32) * 0.02,
            ln2_w=jnp.ones((E,), jnp.float32),
            ln2_b=jnp.zeros((E,), jnp.float32),
            fc_w=jax.random.normal(ks[4], (4 * E, E), jnp.float32) * 0.02,
            fc_b=jax.random.normal(ks[5], (4 * E,), jnp.float32) * 0.02,
            proj_w=jax.random.normal(ks[6], (E, 4 * E), jnp.float32) * 0.02,
            proj_b=jax.random.normal(ks[7], (E,), jnp.float32) * 0.02,
        ))
    return raw


def prepare_params(raw, n_heads):
    """Stack per-layer weights, pre-transpose / pre-split QKV, fold the 1/sqrt(Dh)
    scale into wq/bq, and cast matmul weights to bf16 (f32 accumulation in-kernel)."""
    E = raw[0]["in_w"].shape[1]
    Dh = E // n_heads
    scale = 1.0 / math.sqrt(Dh)

    def stack(fn):
        return jnp.stack([fn(p) for p in raw])

    return dict(
        ln1_w=stack(lambda p: p["ln1_w"].reshape(1, E)),
        ln1_b=stack(lambda p: p["ln1_b"].reshape(1, E)),
        wq=stack(lambda p: (p["in_w"][:E].T * scale).astype(BF)),
        bq=stack(lambda p: (p["in_b"][:E] * scale).reshape(1, E)),
        wk=stack(lambda p: p["in_w"][E:2 * E].T.astype(BF)),
        bk=stack(lambda p: p["in_b"][E:2 * E].reshape(1, E)),
        wv=stack(lambda p: p["in_w"][2 * E:].T.astype(BF)),
        bv=stack(lambda p: p["in_b"][2 * E:].reshape(1, E)),
        wo=stack(lambda p: p["out_w"].T.astype(BF)),        # (E, E), un-split
        bo=stack(lambda p: p["out_b"].reshape(1, E)),
        ln2_w=stack(lambda p: p["ln2_w"].reshape(1, E)),
        ln2_b=stack(lambda p: p["ln2_b"].reshape(1, E)),
        w1=stack(lambda p: p["fc_w"].T.astype(BF)),
        b1=stack(lambda p: p["fc_b"].reshape(1, 4 * E)),
        w2=stack(lambda p: p["proj_w"].T.astype(BF)),
        b2=stack(lambda p: p["proj_b"].reshape(1, E)),
    )


# ----------------------------- fp32 reference -------------------------------

def reference_forward(q, k, v, raw, n_heads):
    """Pure-JAX fp32 reference of the torch module's default forward path."""
    Lq, N, E = q.shape
    H = n_heads
    Dh = E // H
    scale = 1.0 / math.sqrt(Dh)

    def split_heads(t):                      # (L, N, E) -> (N, H, L, Dh)
        L_, N_, _ = t.shape
        return t.reshape(L_, N_, H, Dh).transpose(1, 2, 0, 3)

    x = q
    for p in raw:
        ln1 = _layernorm(x, p["ln1_w"], p["ln1_b"])
        qp = ln1 @ p["in_w"][:E].T + p["in_b"][:E]
        kp = k @ p["in_w"][E:2 * E].T + p["in_b"][E:2 * E]
        vp = v @ p["in_w"][2 * E:].T + p["in_b"][2 * E:]
        qh = split_heads(qp) * scale
        kh = split_heads(kp)
        vh = split_heads(vp)
        s = jnp.einsum("nhqd,nhkd->nhqk", qh, kh)
        a = jax.nn.softmax(s, axis=-1)
        ctx = jnp.einsum("nhqk,nhkd->nhqd", a, vh)
        ctx = ctx.transpose(2, 0, 1, 3).reshape(Lq, N, E)
        x = x + ctx @ p["out_w"].T + p["out_b"]
        ln2 = _layernorm(x, p["ln2_w"], p["ln2_b"])
        h1 = ln2 @ p["fc_w"].T + p["fc_b"]
        h1 = h1 * jax.nn.sigmoid(1.702 * h1)
        x = x + h1 @ p["proj_w"].T + p["proj_b"]
    return x


if __name__ == "__main__":
    key = jax.random.PRNGKey(0)
    width, heads, layers = 32, 4, 2
    Lq, Lk, N = 8, 16, 3          # odd N exercises the batch-tile padding path

    kq, kk, kv, kp = jax.random.split(key, 4)
    q = jax.random.normal(kq, (Lq, N, width), jnp.float32)
    k = jax.random.normal(kk, (Lk, N, width), jnp.float32)
    v = jax.random.normal(kv, (Lk, N, width), jnp.float32)

    raw = init_raw_params(kp, width, layers)
    params = prepare_params(raw, heads)

    # TODO(synk): optional pos / query_pos / key_padding_mask inputs (default-None
    # path only) and torch.utils.checkpoint (with_ckpt=True) are not wired in.
    out = fully_cross_attention_transformer(q, k, v, params, heads)
    out = jax.block_until_ready(out)
    assert out.shape == (Lq, N, width) and out.dtype == jnp.float32

    ref = reference_forward(q, k, v, raw, heads)
    err = float(jnp.max(jnp.abs(out - ref)))
    assert err < 5e-2, f"max abs error vs fp32 reference too large: {err}"
    print("KERNEL_OK")
</pallas_src>

<mosaic_0001>
module attributes {stable_mosaic.version = 11 : i64} {
  func.func @_stack_kernel(%arg0: i32, %arg1: i32, %arg2: memref<2x8x32xbf16, #tpu.memory_space<vmem>>, %arg3: memref<2x16x32xbf16, #tpu.memory_space<vmem>>, %arg4: memref<2x16x32xbf16, #tpu.memory_space<vmem>>, %arg5: memref<1x1x32xf32, #tpu.memory_space<vmem>>, %arg6: memref<1x1x32xf32, #tpu.memory_space<vmem>>, %arg7: memref<1x32x32xbf16, #tpu.memory_space<vmem>>, %arg8: memref<1x1x32xf32, #tpu.memory_space<vmem>>, %arg9: memref<1x32x32xbf16, #tpu.memory_space<vmem>>, %arg10: memref<1x1x32xf32, #tpu.memory_space<vmem>>, %arg11: memref<1x32x32xbf16, #tpu.memory_space<vmem>>, %arg12: memref<1x1x32xf32, #tpu.memory_space<vmem>>, %arg13: memref<1x32x32xbf16, #tpu.memory_space<vmem>>, %arg14: memref<1x1x32xf32, #tpu.memory_space<vmem>>, %arg15: memref<1x1x32xf32, #tpu.memory_space<vmem>>, %arg16: memref<1x1x32xf32, #tpu.memory_space<vmem>>, %arg17: memref<1x32x128xbf16, #tpu.memory_space<vmem>>, %arg18: memref<1x1x128xf32, #tpu.memory_space<vmem>>, %arg19: memref<1x128x32xbf16, #tpu.memory_space<vmem>>, %arg20: memref<1x1x32xf32, #tpu.memory_space<vmem>>, %arg21: memref<2x8x32xf32, #tpu.memory_space<vmem>>, %arg22: memref<16x32xf32, #tpu.memory_space<vmem>>) attributes {dimension_semantics = [#tpu.dimension_semantics<parallel>, #tpu.dimension_semantics<arbitrary>], iteration_bounds = array<i64: 2, 2>, scalar_prefetch = 0 : i64, scratch_operands = 1 : i64, tpu.core_type = #tpu.core_type<tc>, window_params = [{transform_indices = @transform_0, window_bounds = array<i64: 2, 8, 32>}, {transform_indices = @transform_1, window_bounds = array<i64: 2, 16, 32>}, {transform_indices = @transform_2, window_bounds = array<i64: 2, 16, 32>}, {transform_indices = @transform_3, window_bounds = array<i64: 1, 1, 32>}, {transform_indices = @transform_4, window_bounds = array<i64: 1, 1, 32>}, {transform_indices = @transform_5, window_bounds = array<i64: 1, 32, 32>}, {transform_indices = @transform_6, window_bounds = array<i64: 1, 1, 32>}, {transform_indices = @transform_7, window_bounds = array<i64: 1, 32, 32>}, {transform_indices = @transform_8, window_bounds = array<i64: 1, 1, 32>}, {transform_indices = @transform_9, window_bounds = array<i64: 1, 32, 32>}, {transform_indices = @transform_10, window_bounds = array<i64: 1, 1, 32>}, {transform_indices = @transform_11, window_bounds = array<i64: 1, 32, 32>}, {transform_indices = @transform_12, window_bounds = array<i64: 1, 1, 32>}, {transform_indices = @transform_13, window_bounds = array<i64: 1, 1, 32>}, {transform_indices = @transform_14, window_bounds = array<i64: 1, 1, 32>}, {transform_indices = @transform_15, window_bounds = array<i64: 1, 32, 128>}, {transform_indices = @transform_16, window_bounds = array<i64: 1, 1, 128>}, {transform_indices = @transform_17, window_bounds = array<i64: 1, 128, 32>}, {transform_indices = @transform_18, window_bounds = array<i64: 1, 1, 32>}, {transform_indices = @transform_19, window_bounds = array<i64: 2, 8, 32>}]} {
    %c0_i32 = arith.constant 0 : i32
    %0 = arith.cmpi eq, %arg1, %c0_i32 : i32
    %1 = arith.extui %0 : i1 to i32
    %c0_i32_0 = arith.constant 0 : i32
    %2 = arith.cmpi ne, %1, %c0_i32_0 : i32
    scf.if %2 {
      %c0_92 = arith.constant 0 : index
      %c0_93 = arith.constant 0 : index
      %c0_94 = arith.constant 0 : index
      %195 = vector.load %arg2[%c0_92, %c0_93, %c0_94] : memref<2x8x32xbf16, #tpu.memory_space<vmem>>, vector<2x8x32xbf16>
      %196 = vector.shape_cast %195 : vector<2x8x32xbf16> to vector<16x32xbf16>
      %197 = arith.extf %196 : vector<16x32xbf16> to vector<16x32xf32>
      %c0_95 = arith.constant 0 : index
      %c0_96 = arith.constant 0 : index
      %198 = vector.load %arg22[%c0_95, %c0_96] : memref<16x32xf32, #tpu.memory_space<vmem>>, vector<16x32xf32>
      tpu.vector_store %arg22[%c0_95, %c0_96], %197 {strides = array<i32>} : memref<16x32xf32, #tpu.memory_space<vmem>>, vector<16x32xf32>,
    } else {
    }
    %c0 = arith.constant 0 : index
    %c0_1 = arith.constant 0 : index
    %3 = vector.load %arg22[%c0, %c0_1] : memref<16x32xf32, #tpu.memory_space<vmem>>, vector<16x32xf32>
    %c0_2 = arith.constant 0 : index
    %c0_3 = arith.constant 0 : index
    %c0_4 = arith.constant 0 : index
    %4 = vector.load %arg5[%c0_2, %c0_3, %c0_4] : memref<1x1x32xf32, #tpu.memory_space<vmem>>, vector<1x1x32xf32>
    %5 = vector.shape_cast %4 : vector<1x1x32xf32> to vector<1x32xf32>
    %c0_5 = arith.constant 0 : index
    %c0_6 = arith.constant 0 : index
    %c0_7 = arith.constant 0 : index
    %6 = vector.load %arg6[%c0_5, %c0_6, %c0_7] : memref<1x1x32xf32, #tpu.memory_space<vmem>>, vector<1x1x32xf32>
    %7 = vector.shape_cast %6 : vector<1x1x32xf32> to vector<1x32xf32>
    %cst = arith.constant dense<0.000000e+00> : vector<16xf32>
    %8 = vector.multi_reduction <add>, %3, %cst [1] : vector<16x32xf32> to vector<16xf32>
    %9 = vector.shape_cast %8 : vector<16xf32> to vector<16x1xf32>
    %cst_8 = arith.constant 3.200000e+01 : f32
    %10 = vector.broadcast %cst_8 : f32 to vector<16x1xf32>
    %11 = arith.divf %9, %10 : vector<16x1xf32>
    %12 = vector.broadcast %11 : vector<16x1xf32> to vector<16x32xf32>
    %13 = arith.subf %3, %12 : vector<16x32xf32>
    %14 = arith.mulf %13, %13 : vector<16x32xf32>
    %cst_9 = arith.constant dense<0.000000e+00> : vector<16xf32>
    %15 = vector.multi_reduction <add>, %14, %cst_9 [1] : vector<16x32xf32> to vector<16xf32>
    %16 = vector.shape_cast %15 : vector<16xf32> to vector<16x1xf32>
    %cst_10 = arith.constant 3.200000e+01 : f32
    %17 = vector.broadcast %cst_10 : f32 to vector<16x1xf32>
    %18 = arith.divf %16, %17 : vector<16x1xf32>
    %19 = vector.broadcast %11 : vector<16x1xf32> to vector<16x32xf32>
    %20 = arith.subf %3, %19 : vector<16x32xf32>
    %cst_11 = arith.constant 9.99999974E-6 : f32
    %21 = vector.broadcast %cst_11 : f32 to vector<16x1xf32>
    %22 = arith.addf %18, %21 : vector<16x1xf32>
    %23 = math.rsqrt %22 : vector<16x1xf32>
    %24 = vector.broadcast %23 : vector<16x1xf32> to vector<16x32xf32>
    %25 = arith.mulf %20, %24 : vector<16x32xf32>
    %26 = vector.broadcast %5 : vector<1x32xf32> to vector<16x32xf32>
    %27 = arith.mulf %25, %26 : vector<16x32xf32>
    %28 = vector.broadcast %7 : vector<1x32xf32> to vector<16x32xf32>
    %29 = arith.addf %27, %28 : vector<16x32xf32>
    %c0_12 = arith.constant 0 : index
    %c0_13 = arith.constant 0 : index
    %c0_14 = arith.constant 0 : index
    %30 = vector.load %arg3[%c0_12, %c0_13, %c0_14] : memref<2x16x32xbf16, #tpu.memory_space<vmem>>, vector<2x16x32xbf16>
    %31 = vector.shape_cast %30 : vector<2x16x32xbf16> to vector<32x32xbf16>
    %c0_15 = arith.constant 0 : index
    %c0_16 = arith.constant 0 : index
    %c0_17 = arith.constant 0 : index
    %32 = vector.load %arg4[%c0_15, %c0_16, %c0_17] : memref<2x16x32xbf16, #tpu.memory_space<vmem>>, vector<2x16x32xbf16>
    %33 = vector.shape_cast %32 : vector<2x16x32xbf16> to vector<32x32xbf16>
    %34 = arith.truncf %29 : vector<16x32xf32> to vector<16x32xbf16>
    %c0_18 = arith.constant 0 : index
    %c0_19 = arith.constant 0 : index
    %c0_20 = arith.constant 0 : index
    %35 = vector.load %arg7[%c0_18, %c0_19, %c0_20] : memref<1x32x32xbf16, #tpu.memory_space<vmem>>, vector<1x32x32xbf16>
    %36 = vector.shape_cast %35 : vector<1x32x32xbf16> to vector<32x32xbf16>
    %cst_21 = arith.constant dense<0.000000e+00> : vector<16x32xf32>
    %37 = tpu.matmul %34, %36, %cst_21 {dimension_numbers = #tpu.dot_dimension_numbers<[1], [0], [0], [1], [0, 0, 1, 1], [], []>} : vector<16x32xbf16>, vector<32x32xbf16>, vector<16x32xf32> -> vector<16x32xf32>
    %c0_22 = arith.constant 0 : index
    %c0_23 = arith.constant 0 : index
    %c0_24 = arith.constant 0 : index
    %38 = vector.load %arg8[%c0_22, %c0_23, %c0_24] : memref<1x1x32xf32, #tpu.memory_space<vmem>>, vector<1x1x32xf32>
    %39 = vector.shape_cast %38 : vector<1x1x32xf32> to vector<1x32xf32>
    %40 = vector.broadcast %39 : vector<1x32xf32> to vector<16x32xf32>
    %41 = arith.addf %37, %40 : vector<16x32xf32>
    %c0_25 = arith.constant 0 : index
    %c0_26 = arith.constant 0 : index
    %c0_27 = arith.constant 0 : index
    %42 = vector.load %arg9[%c0_25, %c0_26, %c0_27] : memref<1x32x32xbf16, #tpu.memory_space<vmem>>, vector<1x32x32xbf16>
    %43 = vector.shape_cast %42 : vector<1x32x32xbf16> to vector<32x32xbf16>
    %cst_28 = arith.constant dense<0.000000e+00> : vector<32x32xf32>
    %44 = tpu.matmul %31, %43, %cst_28 {dimension_numbers = #tpu.dot_dimension_numbers<[1], [0], [0], [1], [0, 0, 1, 1], [], []>} : vector<32x32xbf16>, vector<32x32xbf16>, vector<32x32xf32> -> vector<32x32xf32>
    %c0_29 = arith.constant 0 : index
    %c0_30 = arith.constant 0 : index
    %c0_31 = arith.constant 0 : index
    %45 = vector.load %arg10[%c0_29, %c0_30, %c0_31] : memref<1x1x32xf32, #tpu.memory_space<vmem>>, vector<1x1x32xf32>
    %46 = vector.shape_cast %45 : vector<1x1x32xf32> to vector<1x32xf32>
    %47 = vector.broadcast %46 : vector<1x32xf32> to vector<32x32xf32>
    %48 = arith.addf %44, %47 : vector<32x32xf32>
    %c0_32 = arith.constant 0 : index
    %c0_33 = arith.constant 0 : index
    %c0_34 = arith.constant 0 : index
    %49 = vector.load %arg11[%c0_32, %c0_33, %c0_34] : memref<1x32x32xbf16, #tpu.memory_space<vmem>>, vector<1x32x32xbf16>
    %50 = vector.shape_cast %49 : vector<1x32x32xbf16> to vector<32x32xbf16>
    %cst_35 = arith.constant dense<0.000000e+00> : vector<32x32xf32>
    %51 = tpu.matmul %33, %50, %cst_35 {dimension_numbers = #tpu.dot_dimension_numbers<[1], [0], [0], [1], [0, 0, 1, 1], [], []>} : vector<32x32xbf16>, vector<32x32xbf16>, vector<32x32xf32> -> vector<32x32xf32>
    %c0_36 = arith.constant 0 : index
    %c0_37 = arith.constant 0 : index
    %c0_38 = arith.constant 0 : index
    %52 = vector.load %arg12[%c0_36, %c0_37, %c0_38] : memref<1x1x32xf32, #tpu.memory_space<vmem>>, vector<1x1x32xf32>
    %53 = vector.shape_cast %52 : vector<1x1x32xf32> to vector<1x32xf32>
    %54 = vector.broadcast %53 : vector<1x32xf32> to vector<32x32xf32>
    %55 = arith.addf %51, %54 : vector<32x32xf32>
    %56 = vector.shape_cast %41 : vector<16x32xf32> to vector<2x8x32xf32>
    %57 = arith.truncf %56 : vector<2x8x32xf32> to vector<2x8x32xbf16>
    %58 = vector.shape_cast %48 : vector<32x32xf32> to vector<2x16x32xf32>
    %59 = arith.truncf %58 : vector<2x16x32xf32> to vector<2x16x32xbf16>
    %60 = vector.shape_cast %55 : vector<32x32xf32> to vector<2x16x32xf32>
    %61 = arith.truncf %60 : vector<2x16x32xf32> to vector<2x16x32xbf16>
    %62 = vector.extract_strided_slice %57 {offsets = [0, 0, 0], sizes = [2, 8, 8], strides = [1, 1, 1]} : vector<2x8x32xbf16> to vector<2x8x8xbf16>
    %63 = vector.extract_strided_slice %59 {offsets = [0, 0, 0], sizes = [2, 16, 8], strides = [1, 1, 1]} : vector<2x16x32xbf16> to vector<2x16x8xbf16>
    %64 = vector.extract_strided_slice %61 {offsets = [0, 0, 0], sizes = [2, 16, 8], strides = [1, 1, 1]} : vector<2x16x32xbf16> to vector<2x16x8xbf16>
    "tpu.trace_start"() <{level = 10 : i32, message = "bqd,bkd->bqk"}> : () -> ()
    %cst_39 = arith.constant dense<0.000000e+00> : vector<2x8x16xf32>
    %65 = tpu.matmul %62, %63, %cst_39 {dimension_numbers = #tpu.dot_dimension_numbers<[2], [2], [1], [1], [0, 0, 0, 1, 1, 1], [0], [0]>} : vector<2x8x8xbf16>, vector<2x16x8xbf16>, vector<2x8x16xf32> -> vector<2x8x16xf32>
    "tpu.trace_stop"() : () -> ()
    %cst_40 = arith.constant dense<0xFF800000> : vector<2x8xf32>
    %66 = vector.multi_reduction <maximumf>, %65, %cst_40 [2] : vector<2x8x16xf32> to vector<2x8xf32>
    %67 = vector.shape_cast %66 : vector<2x8xf32> to vector<2x8x1xf32>
    %68 = vector.broadcast %67 : vector<2x8x1xf32> to vector<2x8x16xf32>
    %69 = arith.subf %65, %68 : vector<2x8x16xf32>
    %70 = math.exp %69 : vector<2x8x16xf32>
    %cst_41 = arith.constant dense<0.000000e+00> : vector<2x8xf32>
    %71 = vector.multi_reduction <add>, %70, %cst_41 [2] : vector<2x8x16xf32> to vector<2x8xf32>
    %72 = vector.shape_cast %71 : vector<2x8xf32> to vector<2x8x1xf32>
    %73 = tpu.reciprocal %72 {approx = true} : vector<2x8x1xf32> -> vector<2x8x1xf32>
    %74 = vector.broadcast %73 : vector<2x8x1xf32> to vector<2x8x16xf32>
    %75 = arith.mulf %70, %74 : vector<2x8x16xf32>
    %76 = arith.truncf %75 : vector<2x8x16xf32> to vector<2x8x16xbf16>
    "tpu.trace_start"() <{level = 10 : i32, message = "bqk,bkd->bqd"}> : () -> ()
    %cst_42 = arith.constant dense<0.000000e+00> : vector<2x8x8xf32>
    %77 = tpu.matmul %76, %64, %cst_42 {dimension_numbers = #tpu.dot_dimension_numbers<[2], [1], [1], [2], [0, 0, 0, 1, 1, 2], [0], [0]>} : vector<2x8x16xbf16>, vector<2x16x8xbf16>, vector<2x8x8xf32> -> vector<2x8x8xf32>
    "tpu.trace_stop"() : () -> ()
    %78 = arith.truncf %77 : vector<2x8x8xf32> to vector<2x8x8xbf16>
    %79 = vector.extract_strided_slice %57 {offsets = [0, 0, 8], sizes = [2, 8, 8], strides = [1, 1, 1]} : vector<2x8x32xbf16> to vector<2x8x8xbf16>
    %80 = vector.extract_strided_slice %59 {offsets = [0, 0, 8], sizes = [2, 16, 8], strides = [1, 1, 1]} : vector<2x16x32xbf16> to vector<2x16x8xbf16>
    %81 = vector.extract_strided_slice %61 {offsets = [0, 0, 8], sizes = [2, 16, 8], strides = [1, 1, 1]} : vector<2x16x32xbf16> to vector<2x16x8xbf16>
    "tpu.trace_start"() <{level = 10 : i32, message = "bqd,bkd->bqk"}> : () -> ()
    %cst_43 = arith.constant dense<0.000000e+00> : vector<2x8x16xf32>
    %82 = tpu.matmul %79, %80, %cst_43 {dimension_numbers = #tpu.dot_dimension_numbers<[2], [2], [1], [1], [0, 0, 0, 1, 1, 1], [0], [0]>} : vector<2x8x8xbf16>, vector<2x16x8xbf16>, vector<2x8x16xf32> -> vector<2x8x16xf32>
    "tpu.trace_stop"() : () -> ()
    %cst_44 = arith.constant dense<0xFF800000> : vector<2x8xf32>
    %83 = vector.multi_reduction <maximumf>, %82, %cst_44 [2] : vector<2x8x16xf32> to vector<2x8xf32>
    %84 = vector.shape_cast %83 : vector<2x8xf32> to vector<2x8x1xf32>
    %85 = vector.broadcast %84 : vector<2x8x1xf32> to vector<2x8x16xf32>
    %86 = arith.subf %82, %85 : vector<2x8x16xf32>
    %87 = math.exp %86 : vector<2x8x16xf32>
    %cst_45 = arith.constant dense<0.000000e+00> : vector<2x8xf32>
    %88 = vector.multi_reduction <add>, %87, %cst_45 [2] : vector<2x8x16xf32> to vector<2x8xf32>
    %89 = vector.shape_cast %88 : vector<2x8xf32> to vector<2x8x1xf32>
    %90 = tpu.reciprocal %89 {approx = true} : vector<2x8x1xf32> -> vector<2x8x1xf32>
    %91 = vector.broadcast %90 : vector<2x8x1xf32> to vector<2x8x16xf32>
    %92 = arith.mulf %87, %91 : vector<2x8x16xf32>
    %93 = arith.truncf %92 : vector<2x8x16xf32> to vector<2x8x16xbf16>
    "tpu.trace_start"() <{level = 10 : i32, message = "bqk,bkd->bqd"}> : () -> ()
    %cst_46 = arith.constant dense<0.000000e+00> : vector<2x8x8xf32>
    %94 = tpu.matmul %93, %81, %cst_46 {dimension_numbers = #tpu.dot_dimension_numbers<[2], [1], [1], [2], [0, 0, 0, 1, 1, 2], [0], [0]>} : vector<2x8x16xbf16>, vector<2x16x8xbf16>, vector<2x8x8xf32> -> vector<2x8x8xf32>
    "tpu.trace_stop"() : () -> ()
    %95 = arith.truncf %94 : vector<2x8x8xf32> to vector<2x8x8xbf16>
    %96 = vector.extract_strided_slice %57 {offsets = [0, 0, 16], sizes = [2, 8, 8], strides = [1, 1, 1]} : vector<2x8x32xbf16> to vector<2x8x8xbf16>
    %97 = vector.extract_strided_slice %59 {offsets = [0, 0, 16], sizes = [2, 16, 8], strides = [1, 1, 1]} : vector<2x16x32xbf16> to vector<2x16x8xbf16>
    %98 = vector.extract_strided_slice %61 {offsets = [0, 0, 16], sizes = [2, 16, 8], strides = [1, 1, 1]} : vector<2x16x32xbf16> to vector<2x16x8xbf16>
    "tpu.trace_start"() <{level = 10 : i32, message = "bqd,bkd->bqk"}> : () -> ()
    %cst_47 = arith.constant dense<0.000000e+00> : vector<2x8x16xf32>
    %99 = tpu.matmul %96, %97, %cst_47 {dimension_numbers = #tpu.dot_dimension_numbers<[2], [2], [1], [1], [0, 0, 0, 1, 1, 1], [0], [0]>} : vector<2x8x8xbf16>, vector<2x16x8xbf16>, vector<2x8x16xf32> -> vector<2x8x16xf32>
    "tpu.trace_stop"() : () -> ()
    %cst_48 = arith.constant dense<0xFF800000> : vector<2x8xf32>
    %100 = vector.multi_reduction <maximumf>, %99, %cst_48 [2] : vector<2x8x16xf32> to vector<2x8xf32>
    %101 = vector.shape_cast %100 : vector<2x8xf32> to vector<2x8x1xf32>
    %102 = vector.broadcast %101 : vector<2x8x1xf32> to vector<2x8x16xf32>
    %103 = arith.subf %99, %102 : vector<2x8x16xf32>
    %104 = math.exp %103 : vector<2x8x16xf32>
    %cst_49 = arith.constant dense<0.000000e+00> : vector<2x8xf32>
    %105 = vector.multi_reduction <add>, %104, %cst_49 [2] : vector<2x8x16xf32> to vector<2x8xf32>
    %106 = vector.shape_cast %105 : vector<2x8xf32> to vector<2x8x1xf32>
    %107 = tpu.reciprocal %106 {approx = true} : vector<2x8x1xf32> -> vector<2x8x1xf32>
    %108 = vector.broadcast %107 : vector<2x8x1xf32> to vector<2x8x16xf32>
    %109 = arith.mulf %104, %108 : vector<2x8x16xf32>
    %110 = arith.truncf %109 : vector<2x8x16xf32> to vector<2x8x16xbf16>
    "tpu.trace_start"() <{level = 10 : i32, message = "bqk,bkd->bqd"}> : () -> ()
    %cst_50 = arith.constant dense<0.000000e+00> : vector<2x8x8xf32>
    %111 = tpu.matmul %110, %98, %cst_50 {dimension_numbers = #tpu.dot_dimension_numbers<[2], [1], [1], [2], [0, 0, 0, 1, 1, 2], [0], [0]>} : vector<2x8x16xbf16>, vector<2x16x8xbf16>, vector<2x8x8xf32> -> vector<2x8x8xf32>
    "tpu.trace_stop"() : () -> ()
    %112 = arith.truncf %111 : vector<2x8x8xf32> to vector<2x8x8xbf16>
    %113 = vector.extract_strided_slice %57 {offsets = [0, 0, 24], sizes = [2, 8, 8], strides = [1, 1, 1]} : vector<2x8x32xbf16> to vector<2x8x8xbf16>
    %114 = vector.extract_strided_slice %59 {offsets = [0, 0, 24], sizes = [2, 16, 8], strides = [1, 1, 1]} : vector<2x16x32xbf16> to vector<2x16x8xbf16>
    %115 = vector.extract_strided_slice %61 {offsets = [0, 0, 24], sizes = [2, 16, 8], strides = [1, 1, 1]} : vector<2x16x32xbf16> to vector<2x16x8xbf16>
    "tpu.trace_start"() <{level = 10 : i32, message = "bqd,bkd->bqk"}> : () -> ()
    %cst_51 = arith.constant dense<0.000000e+00> : vector<2x8x16xf32>
    %116 = tpu.matmul %113, %114, %cst_51 {dimension_numbers = #tpu.dot_dimension_numbers<[2], [2], [1], [1], [0, 0, 0, 1, 1, 1], [0], [0]>} : vector<2x8x8xbf16>, vector<2x16x8xbf16>, vector<2x8x16xf32> -> vector<2x8x16xf32>
    "tpu.trace_stop"() : () -> ()
    %cst_52 = arith.constant dense<0xFF800000> : vector<2x8xf32>
    %117 = vector.multi_reduction <maximumf>, %116, %cst_52 [2] : vector<2x8x16xf32> to vector<2x8xf32>
    %118 = vector.shape_cast %117 : vector<2x8xf32> to vector<2x8x1xf32>
    %119 = vector.broadcast %118 : vector<2x8x1xf32> to vector<2x8x16xf32>
    %120 = arith.subf %116, %119 : vector<2x8x16xf32>
    %121 = math.exp %120 : vector<2x8x16xf32>
    %cst_53 = arith.constant dense<0.000000e+00> : vector<2x8xf32>
    %122 = vector.multi_reduction <add>, %121, %cst_53 [2] : vector<2x8x16xf32> to vector<2x8xf32>
    %123 = vector.shape_cast %122 : vector<2x8xf32> to vector<2x8x1xf32>
    %124 = tpu.reciprocal %123 {approx = true} : vector<2x8x1xf32> -> vector<2x8x1xf32>
    %125 = vector.broadcast %124 : vector<2x8x1xf32> to vector<2x8x16xf32>
    %126 = arith.mulf %121, %125 : vector<2x8x16xf32>
    %127 = arith.truncf %126 : vector<2x8x16xf32> to vector<2x8x16xbf16>
    "tpu.trace_start"() <{level = 10 : i32, message = "bqk,bkd->bqd"}> : () -> ()
    %cst_54 = arith.constant dense<0.000000e+00> : vector<2x8x8xf32>
    %128 = tpu.matmul %127, %115, %cst_54 {dimension_numbers = #tpu.dot_dimension_numbers<[2], [1], [1], [2], [0, 0, 0, 1, 1, 2], [0], [0]>} : vector<2x8x16xbf16>, vector<2x16x8xbf16>, vector<2x8x8xf32> -> vector<2x8x8xf32>
    "tpu.trace_stop"() : () -> ()
    %129 = arith.truncf %128 : vector<2x8x8xf32> to vector<2x8x8xbf16>
    %130 = tpu.concatenate %78, %95, %112, %129 in 2 : vector<2x8x8xbf16>, vector<2x8x8xbf16>, vector<2x8x8xbf16>, vector<2x8x8xbf16> -> vector<2x8x32xbf16>
    %131 = vector.shape_cast %130 : vector<2x8x32xbf16> to vector<16x32xbf16>
    %c0_55 = arith.constant 0 : index
    %c0_56 = arith.constant 0 : index
    %c0_57 = arith.constant 0 : index
    %132 = vector.load %arg13[%c0_55, %c0_56, %c0_57] : memref<1x32x32xbf16, #tpu.memory_space<vmem>>, vector<1x32x32xbf16>
    %133 = vector.shape_cast %132 : vector<1x32x32xbf16> to vector<32x32xbf16>
    %cst_58 = arith.constant dense<0.000000e+00> : vector<16x32xf32>
    %134 = tpu.matmul %131, %133, %cst_58 {dimension_numbers = #tpu.dot_dimension_numbers<[1], [0], [0], [1], [0, 0, 1, 1], [], []>} : vector<16x32xbf16>, vector<32x32xbf16>, vector<16x32xf32> -> vector<16x32xf32>
    %c0_59 = arith.constant 0 : index
    %c0_60 = arith.constant 0 : index
    %c0_61 = arith.constant 0 : index
    %135 = vector.load %arg14[%c0_59, %c0_60, %c0_61] : memref<1x1x32xf32, #tpu.memory_space<vmem>>, vector<1x1x32xf32>
    %136 = vector.shape_cast %135 : vector<1x1x32xf32> to vector<1x32xf32>
    %137 = vector.broadcast %136 : vector<1x32xf32> to vector<16x32xf32>
    %138 = arith.addf %134, %137 : vector<16x32xf32>
    %139 = arith.addf %3, %138 : vector<16x32xf32>
    %c0_62 = arith.constant 0 : index
    %c0_63 = arith.constant 0 : index
    %c0_64 = arith.constant 0 : index
    %140 = vector.load %arg15[%c0_62, %c0_63, %c0_64] : memref<1x1x32xf32, #tpu.memory_space<vmem>>, vector<1x1x32xf32>
    %141 = vector.shape_cast %140 : vector<1x1x32xf32> to vector<1x32xf32>
    %c0_65 = arith.constant 0 : index
    %c0_66 = arith.constant 0 : index
    %c0_67 = arith.constant 0 : index
    %142 = vector.load %arg16[%c0_65, %c0_66, %c0_67] : memref<1x1x32xf32, #tpu.memory_space<vmem>>, vector<1x1x32xf32>
    %143 = vector.shape_cast %142 : vector<1x1x32xf32> to vector<1x32xf32>
    %cst_68 = arith.constant dense<0.000000e+00> : vector<16xf32>
    %144 = vector.multi_reduction <add>, %139, %cst_68 [1] : vector<16x32xf32> to vector<16xf32>
    %145 = vector.shape_cast %144 : vector<16xf32> to vector<16x1xf32>
    %cst_69 = arith.constant 3.200000e+01 : f32
    %146 = vector.broadcast %cst_69 : f32 to vector<16x1xf32>
    %147 = arith.divf %145, %146 : vector<16x1xf32>
    %148 = vector.broadcast %147 : vector<16x1xf32> to vector<16x32xf32>
    %149 = arith.subf %139, %148 : vector<16x32xf32>
    %150 = arith.mulf %149, %149 : vector<16x32xf32>
    %cst_70 = arith.constant dense<0.000000e+00> : vector<16xf32>
    %151 = vector.multi_reduction <add>, %150, %cst_70 [1] : vector<16x32xf32> to vector<16xf32>
    %152 = vector.shape_cast %151 : vector<16xf32> to vector<16x1xf32>
    %cst_71 = arith.constant 3.200000e+01 : f32
    %153 = vector.broadcast %cst_71 : f32 to vector<16x1xf32>
    %154 = arith.divf %152, %153 : vector<16x1xf32>
    %155 = vector.broadcast %147 : vector<16x1xf32> to vector<16x32xf32>
    %156 = arith.subf %139, %155 : vector<16x32xf32>
    %cst_72 = arith.constant 9.99999974E-6 : f32
    %157 = vector.broadcast %cst_72 : f32 to vector<16x1xf32>
    %158 = arith.addf %154, %157 : vector<16x1xf32>
    %159 = math.rsqrt %158 : vector<16x1xf32>
    %160 = vector.broadcast %159 : vector<16x1xf32> to vector<16x32xf32>
    %161 = arith.mulf %156, %160 : vector<16x32xf32>
    %162 = vector.broadcast %141 : vector<1x32xf32> to vector<16x32xf32>
    %163 = arith.mulf %161, %162 : vector<16x32xf32>
    %164 = vector.broadcast %143 : vector<1x32xf32> to vector<16x32xf32>
    %165 = arith.addf %163, %164 : vector<16x32xf32>
    %166 = arith.truncf %165 : vector<16x32xf32> to vector<16x32xbf16>
    %c0_73 = arith.constant 0 : index
    %c0_74 = arith.constant 0 : index
    %c0_75 = arith.constant 0 : index
    %167 = vector.load %arg17[%c0_73, %c0_74, %c0_75] : memref<1x32x128xbf16, #tpu.memory_space<vmem>>, vector<1x32x128xbf16>
    %168 = vector.shape_cast %167 : vector<1x32x128xbf16> to vector<32x128xbf16>
    %cst_76 = arith.constant dense<0.000000e+00> : vector<16x128xf32>
    %169 = tpu.matmul %166, %168, %cst_76 {dimension_numbers = #tpu.dot_dimension_numbers<[1], [0], [0], [1], [0, 0, 1, 1], [], []>} : vector<16x32xbf16>, vector<32x128xbf16>, vector<16x128xf32> -> vector<16x128xf32>
    %c0_77 = arith.constant 0 : index
    %c0_78 = arith.constant 0 : index
    %c0_79 = arith.constant 0 : index
    %170 = vector.load %arg18[%c0_77, %c0_78, %c0_79] : memref<1x1x128xf32, #tpu.memory_space<vmem>>, vector<1x1x128xf32>
    %171 = vector.shape_cast %170 : vector<1x1x128xf32> to vector<1x128xf32>
    %172 = vector.broadcast %171 : vector<1x128xf32> to vector<16x128xf32>
    %173 = arith.addf %169, %172 : vector<16x128xf32>
    %cst_80 = arith.constant 1.702000e+00 : f32
    %174 = vector.broadcast %cst_80 : f32 to vector<16x128xf32>
    %175 = arith.mulf %174, %173 : vector<16x128xf32>
    %176 = arith.negf %175 : vector<16x128xf32>
    %177 = math.exp %176 : vector<16x128xf32>
    %cst_81 = arith.constant 1.000000e+00 : f32
    %178 = vector.broadcast %cst_81 : f32 to vector<16x128xf32>
    %179 = arith.addf %178, %177 : vector<16x128xf32>
    %180 = arith.divf %178, %179 : vector<16x128xf32>
    %181 = arith.mulf %173, %180 : vector<16x128xf32>
    %182 = arith.truncf %181 : vector<16x128xf32> to vector<16x128xbf16>
    %c0_82 = arith.constant 0 : index
    %c0_83 = arith.constant 0 : index
    %c0_84 = arith.constant 0 : index
    %183 = vector.load %arg19[%c0_82, %c0_83, %c0_84] : memref<1x128x32xbf16, #tpu.memory_space<vmem>>, vector<1x128x32xbf16>
    %184 = vector.shape_cast %183 : vector<1x128x32xbf16> to vector<128x32xbf16>
    %cst_85 = arith.constant dense<0.000000e+00> : vector<16x32xf32>
    %185 = tpu.matmul %182, %184, %cst_85 {dimension_numbers = #tpu.dot_dimension_numbers<[1], [0], [0], [1], [0, 0, 1, 1], [], []>} : vector<16x128xbf16>, vector<128x32xbf16>, vector<16x32xf32> -> vector<16x32xf32>
    %c0_86 = arith.constant 0 : index
    %c0_87 = arith.constant 0 : index
    %c0_88 = arith.constant 0 : index
    %186 = vector.load %arg20[%c0_86, %c0_87, %c0_88] : memref<1x1x32xf32, #tpu.memory_space<vmem>>, vector<1x1x32xf32>
    %187 = vector.shape_cast %186 : vector<1x1x32xf32> to vector<1x32xf32>
    %188 = vector.broadcast %187 : vector<1x32xf32> to vector<16x32xf32>
    %189 = arith.addf %185, %188 : vector<16x32xf32>
    %190 = arith.addf %139, %189 : vector<16x32xf32>
    %c0_89 = arith.constant 0 : index
    %c0_90 = arith.constant 0 : index
    %191 = vector.load %arg22[%c0_89, %c0_90] : memref<16x32xf32, #tpu.memory_space<vmem>>, vector<16x32xf32>
    tpu.vector_store %arg22[%c0_89, %c0_90], %190 {strides = array<i32>} : memref<16x32xf32, #tpu.memory_space<vmem>>, vector<16x32xf32>,
    %c1_i32 = arith.constant 1 : i32
    %192 = arith.cmpi eq, %arg1, %c1_i32 : i32
    %193 = arith.extui %192 : i1 to i32
    %c0_i32_91 = arith.constant 0 : i32
    %194 = arith.cmpi ne, %193, %c0_i32_91 : i32
    scf.if %194 {
      %195 = vector.shape_cast %190 : vector<16x32xf32> to vector<2x8x32xf32>
      %c0_92 = arith.constant 0 : index
      %c0_93 = arith.constant 0 : index
      %c0_94 = arith.constant 0 : index
      %196 = vector.load %arg21[%c0_92, %c0_93, %c0_94] : memref<2x8x32xf32, #tpu.memory_space<vmem>>, vector<2x8x32xf32>
      tpu.vector_store %arg21[%c0_92, %c0_93, %c0_94], %195 {strides = array<i32>} : memref<2x8x32xf32, #tpu.memory_space<vmem>>, vector<2x8x32xf32>,
    } else {
    }
    return
  }
  func.func @transform_0(%arg0: i32, %arg1: i32) -> (i32, i32, i32) {
    %c0_i32 = arith.constant 0 : i32
    %c0_i32_0 = arith.constant 0 : i32
    %c0_i32_1 = arith.constant 0 : i32
    return %arg0, %c0_i32, %c0_i32_0 : i32, i32, i32
  }
  func.func @transform_1(%arg0: i32, %arg1: i32) -> (i32, i32, i32) {
    %c0_i32 = arith.constant 0 : i32
    %c0_i32_0 = arith.constant 0 : i32
    %c0_i32_1 = arith.constant 0 : i32
    return %arg0, %c0_i32, %c0_i32_0 : i32, i32, i32
  }
  func.func @transform_2(%arg0: i32, %arg1: i32) -> (i32, i32, i32) {
    %c0_i32 = arith.constant 0 : i32
    %c0_i32_0 = arith.constant 0 : i32
    %c0_i32_1 = arith.constant 0 : i32
    return %arg0, %c0_i32, %c0_i32_0 : i32, i32, i32
  }
  func.func @transform_3(%arg0: i32, %arg1: i32) -> (i32, i32, i32) {
    %c0_i32 = arith.constant 0 : i32
    %c0_i32_0 = arith.constant 0 : i32
    %c0_i32_1 = arith.constant 0 : i32
    return %arg1, %c0_i32, %c0_i32_0 : i32, i32, i32
  }
  func.func @transform_4(%arg0: i32, %arg1: i32) -> (i32, i32, i32) {
    %c0_i32 = arith.constant 0 : i32
    %c0_i32_0 = arith.constant 0 : i32
    %c0_i32_1 = arith.constant 0 : i32
    return %arg1, %c0_i32, %c0_i32_0 : i32, i32, i32
  }
  func.func @transform_5(%arg0: i32, %arg1: i32) -> (i32, i32, i32) {
    %c0_i32 = arith.constant 0 : i32
    %c0_i32_0 = arith.constant 0 : i32
    %c0_i32_1 = arith.constant 0 : i32
    return %arg1, %c0_i32, %c0_i32_0 : i32, i32, i32
  }
  func.func @transform_6(%arg0: i32, %arg1: i32) -> (i32, i32, i32) {
    %c0_i32 = arith.constant 0 : i32
    %c0_i32_0 = arith.constant 0 : i32
    %c0_i32_1 = arith.constant 0 : i32
    return %arg1, %c0_i32, %c0_i32_0 : i32, i32, i32
  }
  func.func @transform_7(%arg0: i32, %arg1: i32) -> (i32, i32, i32) {
    %c0_i32 = arith.constant 0 : i32
    %c0_i32_0 = arith.constant 0 : i32
    %c0_i32_1 = arith.constant 0 : i32
    return %arg1, %c0_i32, %c0_i32_0 : i32, i32, i32
  }
  func.func @transform_8(%arg0: i32, %arg1: i32) -> (i32, i32, i32) {
    %c0_i32 = arith.constant 0 : i32
    %c0_i32_0 = arith.constant 0 : i32
    %c0_i32_1 = arith.constant 0 : i32
    return %arg1, %c0_i32, %c0_i32_0 : i32, i32, i32
  }
  func.func @transform_9(%arg0: i32, %arg1: i32) -> (i32, i32, i32) {
    %c0_i32 = arith.constant 0 : i32
    %c0_i32_0 = arith.constant 0 : i32
    %c0_i32_1 = arith.constant 0 : i32
    return %arg1, %c0_i32, %c0_i32_0 : i32, i32, i32
  }
  func.func @transform_10(%arg0: i32, %arg1: i32) -> (i32, i32, i32) {
    %c0_i32 = arith.constant 0 : i32
    %c0_i32_0 = arith.constant 0 : i32
    %c0_i32_1 = arith.constant 0 : i32
    return %arg1, %c0_i32, %c0_i32_0 : i32, i32, i32
  }
  func.func @transform_11(%arg0: i32, %arg1: i32) -> (i32, i32, i32) {
    %c0_i32 = arith.constant 0 : i32
    %c0_i32_0 = arith.constant 0 : i32
    %c0_i32_1 = arith.constant 0 : i32
    return %arg1, %c0_i32, %c0_i32_0 : i32, i32, i32
  }
  func.func @transform_12(%arg0: i32, %arg1: i32) -> (i32, i32, i32) {
    %c0_i32 = arith.constant 0 : i32
    %c0_i32_0 = arith.constant 0 : i32
    %c0_i32_1 = arith.constant 0 : i32
    return %arg1, %c0_i32, %c0_i32_0 : i32, i32, i32
  }
  func.func @transform_13(%arg0: i32, %arg1: i32) -> (i32, i32, i32) {
    %c0_i32 = arith.constant 0 : i32
    %c0_i32_0 = arith.constant 0 : i32
    %c0_i32_1 = arith.constant 0 : i32
    return %arg1, %c0_i32, %c0_i32_0 : i32, i32, i32
  }
  func.func @transform_14(%arg0: i32, %arg1: i32) -> (i32, i32, i32) {
    %c0_i32 = arith.constant 0 : i32
    %c0_i32_0 = arith.constant 0 : i32
    %c0_i32_1 = arith.constant 0 : i32
    return %arg1, %c0_i32, %c0_i32_0 : i32, i32, i32
  }
  func.func @transform_15(%arg0: i32, %arg1: i32) -> (i32, i32, i32) {
    %c0_i32 = arith.constant 0 : i32
    %c0_i32_0 = arith.constant 0 : i32
    %c0_i32_1 = arith.constant 0 : i32
    return %arg1, %c0_i32, %c0_i32_0 : i32, i32, i32
  }
  func.func @transform_16(%arg0: i32, %arg1: i32) -> (i32, i32, i32) {
    %c0_i32 = arith.constant 0 : i32
    %c0_i32_0 = arith.constant 0 : i32
    %c0_i32_1 = arith.constant 0 : i32
    return %arg1, %c0_i32, %c0_i32_0 : i32, i32, i32
  }
  func.func @transform_17(%arg0: i32, %arg1: i32) -> (i32, i32, i32) {
    %c0_i32 = arith.constant 0 : i32
    %c0_i32_0 = arith.constant 0 : i32
    %c0_i32_1 = arith.constant 0 : i32
    return %arg1, %c0_i32, %c0_i32_0 : i32, i32, i32
  }
  func.func @transform_18(%arg0: i32, %arg1: i32) -> (i32, i32, i32) {
    %c0_i32 = arith.constant 0 : i32
    %c0_i32_0 = arith.constant 0 : i32
    %c0_i32_1 = arith.constant 0 : i32
    return %arg1, %c0_i32, %c0_i32_0 : i32, i32, i32
  }
  func.func @transform_19(%arg0: i32, %arg1: i32) -> (i32, i32, i32) {
    %c0_i32 = arith.constant 0 : i32
    %c0_i32_0 = arith.constant 0 : i32
    %c0_i32_1 = arith.constant 0 : i32
    return %arg0, %c0_i32, %c0_i32_0 : i32, i32, i32
  }
}

</mosaic_0001>

<bundles_post_ra>
// kernel: tpu_custom_call.1
= control target key start
LH: loop header
LB: loop body
LE: loop exit
PB: predicated region body
PF: predicated region fallthrough
CT: control target
= control target key end

     0   :  { %s5142_s0 = inlined_call_operand.hbm [shape: bf16[4,8,32], index: 0, kind: input, shape index: {}]   ;;  %s5143_s1 = inlined_call_operand.vmem [shape: bf16[4,16,32], index: 1, kind: input, shape index: {}]   ;;  %s5144_s2 = inlined_call_operand.vmem [shape: bf16[4,16,32], index: 2, kind: input, shape index: {}]   ;;  %s5145_s3 = inlined_call_operand.hbm [shape: f32[2,1,32], index: 3, kind: input, shape index: {}]   ;;  %s5146_s4 = inlined_call_operand.hbm [shape: f32[2,1,32], index: 4, kind: input, shape index: {}]   ;;  %s5147_s5 = inlined_call_operand.vmem [shape: bf16[2,32,32], index: 5, kind: input, shape index: {}]   ;;  %s5148_s6 = inlined_call_operand.hbm [shape: f32[2,1,32], index: 6, kind: input, shape index: {}]   ;;  %s5149_s7 = inlined_call_operand.vmem [shape: bf16[2,32,32], index: 7, kind: input, shape index: {}]   ;;  %s5150_s8 = inlined_call_operand.hbm [shape: f32[2,1,32], index: 8, kind: input, shape index: {}]   ;;  %s5151_s9 = inlined_call_operand.vmem [shape: bf16[2,32,32], index: 9, kind: input, shape index: {}]   ;;  %s5152_s10 = inlined_call_operand.hbm [shape: f32[2,1,32], index: 10, kind: input, shape index: {}]   ;;  %s5153_s11 = inlined_call_operand.vmem [shape: bf16[2,32,32], index: 11, kind: input, shape index: {}]   ;;  %s5154_s12 = inlined_call_operand.hbm [shape: f32[2,1,32], index: 12, kind: input, shape index: {}]   ;;  %s5155_s13 = inlined_call_operand.hbm [shape: f32[2,1,32], index: 13, kind: input, shape index: {}]   ;;  %s5156_s14 = inlined_call_operand.hbm [shape: f32[2,1,32], index: 14, kind: input, shape index: {}]   ;;  %s5157_s15 = inlined_call_operand.hbm [shape: bf16[2,32,128], index: 15, kind: input, shape index: {}]   ;;  %s5158_s16 = inlined_call_operand.hbm [shape: f32[2,1,128], index: 16, kind: input, shape index: {}]   ;;  %s5159_s17 = inlined_call_operand.vmem [shape: bf16[2,128,32], index: 17, kind: input, shape index: {}]   ;;  %s5160_s18 = inlined_call_operand.vmem [shape: f32[2,1,32], index: 18, kind: input, shape index: {}]   ;;  %s5161_s19 = inlined_call_operand.hbm [shape: f32[4,8,32], index: 19, kind: output, shape index: {}]  }
   0x1   :  { %5200 = sst [smem:[#allocation46_spill]] %s5142_s0 }
   0x2   :  { %5201 = sst [smem:[#allocation47_spill]] %s5143_s1 }
   0x3   :  { %5202 = sst [smem:[#allocation48_spill]] %s5144_s2 }
   0x4   :  { %5203 = sst [smem:[#allocation49_spill]] %s5145_s3 }
   0x5   :  { %5204 = sst [smem:[#allocation50_spill]] %s5146_s4 }
   0x6   :  { %5205 = sst [smem:[#allocation51_spill]] %s5147_s5 }
   0x7   :  { %5206 = sst [smem:[#allocation52_spill]] %s5148_s6 }
   0x8   :  { %5207 = sst [smem:[#allocation53_spill]] %s5149_s7 }
   0x9   :  { %5208 = sst [smem:[#allocation54_spill]] %s5150_s8 }
   0xa   :  { %5209 = sst [smem:[#allocation55_spill]] %s5151_s9 }
   0xb   :  { %5210 = sst [smem:[#allocation56_spill]] %s5152_s10 }
   0xc   :  { %5211 = sst [smem:[#allocation57_spill]] %s5153_s11 }
   0xd   :  { %5212 = sst [smem:[#allocation58_spill]] %s5154_s12 }
   0xe   :  { %5213 = sst [smem:[#allocation59_spill]] %s5155_s13 }
   0xf   :  { %5214 = sst [smem:[#allocation60_spill]] %s5156_s14 }
  0x10   :  { %5215 = sst [smem:[#allocation61_spill]] %s5157_s15 }
  0x11   :  { %5216 = sst [smem:[#allocation62_spill]] %s5158_s16 }
  0x12   :  { %5217 = sst [smem:[#allocation63_spill]] %s5159_s17 }
  0x13   :  { %5218 = sst [smem:[#allocation64_spill]] %s5160_s18 }
  0x14   :  { %5219 = sst [smem:[#allocation65_spill]] %s5161_s19 }
  0x15   :  { %24 = vsyncpa [#allocation4], 0 }
  0x16   :  { %26 = vsyncpa [#allocation4 + $0x1], 0 }
  0x17   :  { %27 = vsyncpa [#allocation7], 0 }
  0x18   :  { %29 = vsyncpa [#allocation7 + $0x1], 0 }
  0x19   :  { %30 = vsyncpa [#allocation10], 0 }
  0x1a   :  { %32 = vsyncpa [#allocation10 + $0x1], 0 }
  0x1b   :  { %33 = vsyncpa [#allocation13], 0 }
  0x1c   :  { %35 = vsyncpa [#allocation13 + $0x1], 0 }
  0x1d   :  { %36 = vsyncpa [#allocation16], 0 }
  0x1e   :  { %38 = vsyncpa [#allocation16 + $0x1], 0 }
  0x1f   :  { %39 = vsyncpa [#allocation19], 0 }
  0x20   :  { %41 = vsyncpa [#allocation19 + $0x1], 0 }
  0x21   :  { %42 = vsyncpa [#allocation5], 0 }
  0x22   :  { %44 = vsyncpa [#allocation5 + $0x1], 0  ;;  %s4213_s0 = smov 0   ;;  %s4215_s30 = smov 0  }
  0x23   :  { %s4217_s20 = smov 0   ;;  %s4219_s21 = smov 0  }
  0x24   :  { %s4221_s1 = smov 0   ;;  %s4223_s22 = smov 0  }
  0x25   :  { %s4225_s2 = smov 0   ;;  %s4227_s23 = smov 0  }
  0x26   :  { %s4229_s24 = smov 0   ;;  %s4231_s25 = smov 0  }
  0x27   :  { %s4233_s3 = smov 0  }
  0x28 LB: > { %5220 = sst [smem:[#allocation29_spill]] %s4052_s30  ;;  %p5169_p0 = scmp.eq.s32.totalorder %s4088_s3, 0  ;;  %s4088_s3 = sphi %s4233_s3, %s50_s3   ;;  %s4084_s25 = sphi %s4231_s25, %s5322_s25   ;;  %s4080_s24 = sphi %s4229_s24, %s5321_s24   ;;  %s4076_s23 = sphi %s4227_s23, %s5320_s23   ;;  %s4072_s2 = sphi %s4225_s2, %s5319_s2   ;;  %s4068_s22 = sphi %s4223_s22, %s5318_s22   ;;  %s4064_s1 = sphi %s4221_s1, %s5317_s1   ;;  %s4060_s21 = sphi %s4219_s21, %s5316_s21   ;;  %s4056_s20 = sphi %s4217_s20, %s5315_s20   ;;  %s4052_s30 = sphi %s4215_s30, %s5314_s30   ;;  %s4048_s0 = sphi %s4213_s0, %s5313_s0  }
  0x29   : > { %5221 = sst [smem:[#allocation30_spill]] %s4056_s20  ;;  %p154_p1 = scmp.ne.s32.totalorder %s4056_s20, %s4052_s30 }
  0x2a   : > { %5222 = sst [smem:[#allocation31_spill]] %s4060_s21  ;;  %p5168_p2 = scmp.lt.s32.totalorder %s4088_s3, 4 }
  0x2b   : > { %5223 = sst [smem:[#allocation32_spill]] %s4064_s1  ;;  %p156_p3 = por %p154_p1, %p5169_p0 }
  0x2c   : > { %5224 = sst [smem:[#allocation33_spill]] %s4068_s22  ;;  %s4275_s26 = sand.u32 1, %s4088_s3  }
  0x2d   : > { %5225 = sst [smem:[#allocation34_spill]] %s4072_s2  ;;  %s4278_s27 = sand.u32 1, %s4056_s20  }
  0x2e   : > { %5226 = sst [smem:[#allocation35_spill]] %s4076_s23  ;;  %s4281_s28 = sshll.u32 %s4080_s24, 4 }
  0x2f   : > { %5227 = sst [smem:[#allocation36_spill]] %s4080_s24  ;;  %s5230_s18 = sld [smem:[#allocation49_spill]] }
  0x30   : > { %5228 = sst [smem:[#allocation37_spill]] %s4084_s25  ;;  %s644_s11 = scalar_lea.vmem [#allocation6], %s4278_s27 }
  0x31   : > { %5229 = sst [smem:[#allocation38_spill]] %s4088_s3  ;;  %s651_s9 = sshll.u32 %s644_s11, 4  ;;  %s4290_s9 = int_to_ptr.vmem [resolvable:$true] %s651_s9 }
  0x32   : > { %p4294_p4 = pnand %p5168_p2, %p156_p3 }
  0x34   : > { %s5231_s7 = scalar_select %p4294_p4, 1, 0 }
  0x35   : > { %s4287_s17 = scalar_lea.hbm %s5230_s18, %s4281_s28  ;;  %p4305_p8 = pneg %p4294_p4 }
  0x36   : > { %s3616_s19 = scalar_lea.hbm %s4287_s17, 16  ;;  %s3621_s23 = scalar_lea.hbm %s5230_s18, 32 }
  0x37   : > { %p3617_p7 = scmp.ne.s32.totalorder %s4287_s17, %s3616_s19  ;;  %p3622_p11 = scmp.lt.u32.totalorder %s4287_s17, %s5230_s18 }
  0x38   : > { %p3623_p12 = scmp.lt.u32.totalorder %s3621_s23, %s3616_s19  ;;  %p3625_p1 = scmp.lt.u32.totalorder %s3616_s19, %s4287_s17 }
  0x39   : > { %p3619_p9 = pnand %p4305_p8, %p3617_p7 }
  0x3a   : > { %p3624_p13 = por %p3623_p12, %p3622_p11 }
  0x3b   : > { %p3620_p10 = pneg %p3619_p9 }
  0x3c   : > { %p3626_p3 = por %p3625_p1, %p3624_p13 }
  0x3e   : > { %p3627_p2 = pnand %p3626_p3, %p3620_p10 }
  0x40   : > { %3630 = shalt.err (!%p3627_p2)
}
  0x41   : > { %s3631_s5 = scalar_lea.vmem %s4290_s9, 16  ;;  %s4090_s2 = smov [#allocation6]  }
  0x42   : > { %p3632_p7 = scmp.ne.s32.totalorder %s4290_s9, %s3631_s5  ;;  %s3636_s11 = sshll.u32 %s4090_s2, 4  ;;  %s3637_s11 = int_to_ptr.vmem [resolvable:$false] %s3636_s11 }
  0x43   : > { %s3638_s14 = scalar_lea.vmem %s3637_s11, 32  ;;  %p3639_p5 = scmp.lt.s32.totalorder %s4290_s9, %s3637_s11 }
  0x44   : > { %p3634_p9 = pnand %p3632_p7, %p4305_p8  ;;  %p3640_p6 = scmp.lt.s32.totalorder %s3638_s14, %s3631_s5 }
  0x46   : > { %p3635_p0 = pneg %p3634_p9  ;;  %p3641_p11 = por %p3640_p6, %p3639_p5 }
  0x48   : > { %p3642_p12 = pnand %p3641_p11, %p3635_p0 }
  0x4a   : > { %3645 = shalt.err (!%p3642_p12)
}
  0x4b   : > { %s5233_s16 = scalar_lea.sflag [#allocation7], %s4275_s26  ;;  %p5234_p2 = scmp.lt.s32.totalorder %s4088_s3, 5 }
  0x4c   : > { %3413 = dma.hbm_to_vmem [thread:$0]  (!%p4294_p4), %s4287_s17, 16, %s4290_s9, %s5233_s16  }
  0x4d   : > { %p5235_p10 = scmp.ge.s32.totalorder %s4088_s3, 1  ;;  %s5238_s6 = sld [smem:[#allocation52_spill]] }
  0x4e   : > { %s686_s11 = scalar_lea.vmem [#allocation9], %s4278_s27 }
  0x4f   : > { %p4334_p13 = pnand %p5235_p10, %p5234_p2  ;;  %s693_s14 = sshll.u32 %s686_s11, 4  ;;  %s694_s14 = int_to_ptr.vmem [resolvable:$true] %s693_s14 }
  0x51   : > { %s5236_s5 = scalar_select %p4334_p13, 1, 0 }
  0x53   : > { %5237 = sst [smem:[#allocation39_spill]] %s5236_s5  ;;  %s4342_s2 = scalar_lea.hbm %s5238_s6, %s4281_s28 }
  0x54   : > { %s3646_s9 = scalar_lea.hbm %s4342_s2, 16  ;;  %s3651_s5 = scalar_lea.hbm %s5238_s6, 32 }
  0x55   : > { %p3647_p0 = scmp.ne.s32.totalorder %s4342_s2, %s3646_s9  ;;  %p3652_p1 = scmp.lt.u32.totalorder %s4342_s2, %s5238_s6 }
  0x56   : > { %p3653_p3 = scmp.lt.u32.totalorder %s3651_s5, %s3646_s9  ;;  %p3655_p9 = scmp.lt.u32.totalorder %s3646_s9, %s4342_s2 }
  0x57   : > { %p3649_p5 = pnand %p3647_p0, %p4305_p8 }
  0x58   : > { %p3654_p7 = por %p3653_p3, %p3652_p1 }
  0x59   : > { %p3650_p6 = pneg %p3649_p5 }
  0x5a   : > { %p3656_p11 = por %p3655_p9, %p3654_p7 }
  0x5c   : > { %p3657_p12 = pnand %p3656_p11, %p3650_p6 }
  0x5e   : > { %3660 = shalt.err (!%p3657_p12)
}
  0x5f   : > { %s3661_s11 = scalar_lea.vmem %s694_s14, 16  ;;  %s4091_s18 = smov [#allocation9]  }
  0x60   : > { %p3662_p2 = scmp.ne.s32.totalorder %s694_s14, %s3661_s11  ;;  %s3666_s12 = sshll.u32 %s4091_s18, 4  ;;  %s3667_s12 = int_to_ptr.vmem [resolvable:$false] %s3666_s12 }
  0x61   : > { %s3668_s17 = scalar_lea.vmem %s3667_s12, 32  ;;  %p3669_p5 = scmp.lt.s32.totalorder %s694_s14, %s3667_s12 }
  0x62   : > { %p3664_p10 = pnand %p3662_p2, %p4305_p8  ;;  %p3670_p13 = scmp.lt.s32.totalorder %s3668_s17, %s3661_s11 }
  0x64   : > { %p3665_p0 = pneg %p3664_p10  ;;  %p3671_p4 = por %p3670_p13, %p3669_p5 }
  0x66   : > { %p3672_p1 = pnand %p3671_p4, %p3665_p0 }
  0x68   : > { %3675 = shalt.err (!%p3672_p1)
}
  0x69   : > { %p5239_p3 = scmp.ne.s32.totalorder %s5231_s7, 0  ;;  %s5240_s5 = scalar_lea.sflag [#allocation10], %s4275_s26 }
  0x6a   : > { %s5241_s10 = sld [smem:[#allocation56_spill]]  ;;  %s736_s12 = scalar_lea.vmem [#allocation12], %s4278_s27 }
  0x6b   : > { %3419 = dma.hbm_to_vmem [thread:$0]  (!%p5239_p3), %s4342_s2, 16, %s694_s14, %s5240_s5  }
  0x6c   : > { %s743_s23 = sshll.u32 %s736_s12, 4  ;;  %s744_s23 = int_to_ptr.vmem [resolvable:$true] %s743_s23 }
  0x70   : > { %s4369_s18 = scalar_lea.hbm %s5241_s10, %s4281_s28  ;;  %s3681_s14 = scalar_lea.hbm %s5241_s10, 32 }
  0x71   : > { %s3676_s11 = scalar_lea.hbm %s4369_s18, 16  ;;  %p3682_p7 = scmp.lt.u32.totalorder %s4369_s18, %s5241_s10 }
  0x72   : > { %p3677_p4 = scmp.ne.s32.totalorder %s4369_s18, %s3676_s11  ;;  %p3683_p9 = scmp.lt.u32.totalorder %s3681_s14, %s3676_s11 }
  0x73   : > { %p3685_p12 = scmp.lt.u32.totalorder %s3676_s11, %s4369_s18 }
  0x74   : > { %p3679_p13 = pnand %p3677_p4, %p4305_p8  ;;  %p3684_p11 = por %p3683_p9, %p3682_p7 }
  0x76   : > { %p3680_p6 = pneg %p3679_p13  ;;  %p3686_p2 = por %p3685_p12, %p3684_p11 }
  0x78   : > { %p3687_p10 = pnand %p3686_p2, %p3680_p6 }
  0x7a   : > { %3690 = shalt.err (!%p3687_p10)
}
  0x7b   : > { %s3691_s16 = scalar_lea.vmem %s744_s23, 16  ;;  %s4092_s12 = smov [#allocation12]  }
  0x7c   : > { %p3692_p0 = scmp.ne.s32.totalorder %s744_s23, %s3691_s16  ;;  %s3696_s19 = sshll.u32 %s4092_s12, 4  ;;  %s3697_s19 = int_to_ptr.vmem [resolvable:$false] %s3696_s19 }
  0x7d   : > { %s3698_s17 = scalar_lea.vmem %s3697_s19, 32  ;;  %p3699_p4 = scmp.lt.s32.totalorder %s744_s23, %s3697_s19 }
  0x7e   : > { %p3694_p5 = pnand %p3692_p0, %p4305_p8  ;;  %p3700_p13 = scmp.lt.s32.totalorder %s3698_s17, %s3691_s16 }
  0x80   : > { %p3695_p1 = pneg %p3694_p5  ;;  %p3701_p3 = por %p3700_p13, %p3699_p4 }
  0x82   : > { %p3702_p7 = pnand %p3701_p3, %p3695_p1 }
  0x84   : > { %3705 = shalt.err (!%p3702_p7)
}
  0x85   : > { %p5242_p9 = scmp.ne.s32.totalorder %s5231_s7, 0  ;;  %s5243_s11 = scalar_lea.sflag [#allocation13], %s4275_s26 }
  0x86   : > { %s5244_s13 = sld [smem:[#allocation59_spill]]  ;;  %s778_s19 = scalar_lea.vmem [#allocation15], %s4278_s27 }
  0x87   : > { %3425 = dma.hbm_to_vmem [thread:$0]  (!%p5242_p9), %s4369_s18, 16, %s744_s23, %s5243_s11  }
  0x88   : > { %s785_s9 = sshll.u32 %s778_s19, 4  ;;  %s786_s9 = int_to_ptr.vmem [resolvable:$true] %s785_s9 }
  0x8c   : > { %s4396_s5 = scalar_lea.hbm %s5244_s13, %s4281_s28  ;;  %s3711_s23 = scalar_lea.hbm %s5244_s13, 32 }
  0x8d   : > { %s3706_s12 = scalar_lea.hbm %s4396_s5, 16  ;;  %p3712_p12 = scmp.lt.u32.totalorder %s4396_s5, %s5244_s13 }
  0x8e   : > { %p3707_p3 = scmp.ne.s32.totalorder %s4396_s5, %s3706_s12  ;;  %p3713_p2 = scmp.lt.u32.totalorder %s3711_s23, %s3706_s12 }
  0x8f   : > { %p3715_p0 = scmp.lt.u32.totalorder %s3706_s12, %s4396_s5 }
  0x90   : > { %p3709_p6 = pnand %p3707_p3, %p4305_p8  ;;  %p3714_p10 = por %p3713_p2, %p3712_p12 }
  0x92   : > { %p3710_p11 = pneg %p3709_p6  ;;  %p3716_p5 = por %p3715_p0, %p3714_p10 }
  0x94   : > { %p3717_p1 = pnand %p3716_p5, %p3710_p11 }
  0x96   : > { %3720 = shalt.err (!%p3717_p1)
}
  0x97   : > { %s3721_s14 = scalar_lea.vmem %s786_s9, 16  ;;  %s4093_s19 = smov [#allocation15]  }
  0x98   : > { %p3722_p4 = scmp.ne.s32.totalorder %s786_s9, %s3721_s14  ;;  %s3726_s16 = sshll.u32 %s4093_s19, 4  ;;  %s3727_s16 = int_to_ptr.vmem [resolvable:$false] %s3726_s16 }
  0x99   : > { %s3728_s17 = scalar_lea.vmem %s3727_s16, 32  ;;  %p3729_p3 = scmp.lt.s32.totalorder %s786_s9, %s3727_s16 }
  0x9a   : > { %p3724_p13 = pnand %p3722_p4, %p4305_p8  ;;  %p3730_p6 = scmp.lt.s32.totalorder %s3728_s17, %s3721_s14 }
  0x9c   : > { %p3725_p7 = pneg %p3724_p13  ;;  %p3731_p9 = por %p3730_p6, %p3729_p3 }
  0x9e   : > { %p3732_p2 = pnand %p3731_p9, %p3725_p7 }
  0xa0   : > { %3735 = shalt.err (!%p3732_p2)
}
  0xa1   : > { %p5245_p12 = scmp.ne.s32.totalorder %s5231_s7, 0  ;;  %s5246_s12 = scalar_lea.sflag [#allocation16], %s4275_s26 }
  0xa2   : > { %s3066_s18 = sshll.u32 %s4278_s27, 4  ;;  %s3156_s23 = sshll.u32 %s4080_s24, 8 }
  0xa3   : > { %3431 = dma.hbm_to_vmem [thread:$0]  (!%p5245_p12), %s4396_s5, 16, %s786_s9, %s5246_s12  }
  0xa4   : > { %s5247_s15 = sld [smem:[#allocation61_spill]]  ;;  %s813_s14 = scalar_lea.vmem [#allocation18], %s3066_s18 }
  0xa5   : > { %s820_s19 = sshll.u32 %s813_s14, 4  ;;  %s5175_s17 = scalar_lea.sflag [#allocation19], %s4275_s26  ;;  %s4426_s19 = int_to_ptr.vmem [resolvable:$true] %s820_s19 }
  0xaa   : > { %s4424_s16 = scalar_lea.hbm %s5247_s15, %s3156_s23  ;;  %s3741_s12 = scalar_lea.hbm %s5247_s15, 512 }
  0xab   : > { %s3736_s6 = scalar_lea.hbm %s4424_s16, 256  ;;  %p3742_p0 = scmp.lt.u32.totalorder %s4424_s16, %s5247_s15 }
  0xac   : > { %p3737_p9 = scmp.ne.s32.totalorder %s4424_s16, %s3736_s6  ;;  %p3743_p5 = scmp.lt.u32.totalorder %s3741_s12, %s3736_s6 }
  0xad   : > { %p3745_p4 = scmp.lt.u32.totalorder %s3736_s6, %s4424_s16 }
  0xae   : > { %p3739_p11 = pnand %p3737_p9, %p4305_p8  ;;  %p3744_p1 = por %p3743_p5, %p3742_p0 }
  0xb0   : > { %p3740_p10 = pneg %p3739_p11  ;;  %p3746_p13 = por %p3745_p4, %p3744_p1 }
  0xb2   : > { %p3747_p7 = pnand %p3746_p13, %p3740_p10 }
  0xb4   : > { %3750 = shalt.err (!%p3747_p7)
}
  0xb5   : > { %s3751_s18 = scalar_lea.vmem %s4426_s19, 256  ;;  %s4094_s2 = smov [#allocation18]  }
  0xb6   : > { %p3752_p3 = scmp.ne.s32.totalorder %s4426_s19, %s3751_s18  ;;  %s3756_s14 = sshll.u32 %s4094_s2, 4  ;;  %s3757_s14 = int_to_ptr.vmem [resolvable:$false] %s3756_s14 }
  0xb7   : > { %s3758_s5 = scalar_lea.vmem %s3757_s14, 512  ;;  %p3759_p9 = scmp.lt.s32.totalorder %s4426_s19, %s3757_s14 }
  0xb8   : > { %p3754_p6 = pnand %p3752_p3, %p4305_p8  ;;  %p3760_p11 = scmp.lt.s32.totalorder %s3758_s5, %s3751_s18 }
  0xba   : > { %p3755_p2 = pneg %p3754_p6  ;;  %p3761_p0 = por %p3760_p11, %p3759_p9 }
  0xbc   : > { %p3762_p5 = pnand %p3761_p0, %p3755_p2 }
  0xbe   : > { %3765 = shalt.err (!%p3762_p5)
}
  0xbf   : > { %s5176_s6 = smov 64   ;;  %s5177_s9 = smov 4  }
  0xc0   : > { %3437 = dma.hbm_to_vmem [thread:$0]  (!%p5245_p12), %s4424_s16, 256, %s4426_s19, %s5175_s17, %s5176_s6, %s5176_s6, %s5177_s9  }
  0xc1   : > { %s4456_s12 = sadd.s32 4294967295, %s4088_s3   ;;  %s3052_s23 = sadd.s32 4294967294, %s4088_s3  }
  0xc2   : > { %s59_s11 = sadd.s32 1, %s4080_s24  ;;  %s62_s18 = sadd.s32 1, %s4084_s25 }
  0xc3   : > { %p60_p10 = scmp.ge.s32.totalorder %s59_s11, 2  ;;  %s69_s2 = sadd.s32 1, %s4068_s22 }
  0xc4   : > { %p76_p1 = scmp.ne.s32.totalorder %s4068_s22, %s4064_s1  ;;  %p82_p4 = scmp.ne.s32.totalorder %s4064_s1, %s4060_s21 }
  0xc5   : > { %s5324_s11 = smov (%p60_p10, %s59_s11), 0  ;;  %s5326_s18 = smov (!%p60_p10, %s62_s18), %s4084_s25 }
  0xc6   : > { %5248 = sst [smem:[#allocation40_spill]] %s5324_s11  ;;  %p5249_p13 = scmp.eq.s32.totalorder %s4088_s3, 0 }
  0xc7   : > { %p83_p3 = scmp.eq.s32.totalorder %s4456_s12, 0  ;;  %p64_p6 = scmp.ge.s32.totalorder %s5326_s18, 2 }
  0xc8   : > { %p4474_p7 = por %p5249_p13, %p76_p1  ;;  %s144_s19 = ssub.s32 %s4080_s24, %s5324_s11 }
  0xc9   : > { %p4484_p2 = por %p83_p3, %p82_p4  ;;  %p145_p9 = scmp.eq.s32.totalorder %s144_s19, 0 }
  0xca   : > { %s5328_s18 = smov (%p64_p6, %s5326_s18), 0  ;;  %s147_s5 = sadd.s32 1, %s4056_s20 }
  0xcb   : > { %s5251_s14 = scalar_select %p4484_p2, 1, 0 }
  0xcc   : > { %5252 = sst [smem:[#allocation41_spill]] %s5328_s18  ;;  %p160_p11 = scmp.ne.s32.totalorder %s4052_s30, %s4048_s0 }
  0xcd   : > { %s66_s17 = ssub.s32 %s4084_s25, %s5328_s18  ;;  %p574_p0 = scmp.eq.s32.totalorder %s4456_s12, 3 }
  0xce   : > { %p67_p5 = scmp.eq.s32.totalorder %s66_s17, 0  ;;  %p4496_p10 = por %p160_p11, %p83_p3 }
  0xcf   : > { %s4501_s9 = scalar_select %p145_p9, %s4056_s20, %s147_s5  }
  0xd0   : > { %s5253_s6 = scalar_select %p4496_p10, 1, 0 }
  0xd1   : > { %5254 = sst [smem:[#allocation42_spill]] %s4501_s9  ;;  %p4509_p13 = por %p574_p0, %p76_p1 }
  0xd2   : > { %s4504_s10 = scalar_select %p67_p5, %s4068_s22, %s69_s2  }
  0xd3   : > { %s5256_s19 = scalar_select %p4509_p13, 1, 0 }
  0xd4   : > { %5255 = sst [smem:[#allocation43_spill]] %s4504_s10  ;;  %p580_p6 = scmp.eq.s32.totalorder %s3052_s23, 3 }
  0xd5   : > { %5257 = sst [smem:[#allocation44_spill]] %s5256_s19  ;;  %s600_s13 = sand.u32 1, %s4068_s22  }
  0xd6   : > { %s3155_s15 = sshll.u32 %s4084_s25, 7  ;;  %p4518_p2 = por %p580_p6, %p82_p4 }
  0xd7   : > { %s3055_s17 = sshll.u32 %s600_s13, 3  ;;  %s5260_s5 = sld [smem:[#allocation46_spill]] }
  0xd8   : > { %s5258_s0 = scalar_select %p4518_p2, 1, 0 }
  0xd9   : > { %p5261_p3 = scmp.lt.s32.totalorder %s4088_s3, 4  ;;  %s604_s2 = scalar_lea.vmem [#allocation3], %s3055_s17 }
  0xda   : > { %5259 = sst [smem:[#allocation45_spill]] %s5258_s0  ;;  %s611_s25 = sshll.u32 %s604_s2, 4  ;;  %s4535_s25 = int_to_ptr.vmem [resolvable:$true] %s611_s25 }
  0xdb   : > { %p4531_p1 = pnand %p5261_p3, %p4474_p7  ;;  %s4537_s10 = scalar_lea.sflag [#allocation4], %s600_s13 }
  0xdd   : > { %s4525_s24 = scalar_lea.hbm %s5260_s5, %s3155_s15  ;;  %p3768_p9 = pneg %p4531_p1 }
  0xde   : > { %s3766_s15 = scalar_lea.hbm %s4525_s24, 128  ;;  %s3771_s16 = scalar_lea.hbm %s5260_s5, 256 }
  0xdf   : > { %p3767_p4 = scmp.ne.s32.totalorder %s4525_s24, %s3766_s15  ;;  %p3772_p7 = scmp.lt.u32.totalorder %s4525_s24, %s5260_s5 }
  0xe0   : > { %p3773_p5 = scmp.lt.u32.totalorder %s3771_s16, %s3766_s15  ;;  %p3775_p3 = scmp.lt.u32.totalorder %s3766_s15, %s4525_s24 }
  0xe1   : > { %p3769_p11 = pnand %p3768_p9, %p3767_p4 }
  0xe2   : > { %p3774_p6 = por %p3773_p5, %p3772_p7 }
  0xe3   : > { %p3770_p0 = pneg %p3769_p11 }
  0xe4   : > { %p3776_p2 = por %p3775_p3, %p3774_p6 }
  0xe6   : > { %p3777_p13 = pnand %p3776_p2, %p3770_p0 }
  0xe8   : > { %3780 = shalt.err (!%p3777_p13)
}
  0xe9   : > { %s3781_s13 = scalar_lea.vmem %s4535_s25, 128  ;;  %s4097_s17 = smov [#allocation3]  }
  0xea   : > { %p3782_p4 = scmp.ne.s32.totalorder %s4535_s25, %s3781_s13  ;;  %s3786_s2 = sshll.u32 %s4097_s17, 4  ;;  %s3787_s2 = int_to_ptr.vmem [resolvable:$false] %s3786_s2 }
  0xeb   : > { %s3788_s22 = scalar_lea.vmem %s3787_s2, 256  ;;  %p3789_p12 = scmp.lt.s32.totalorder %s4535_s25, %s3787_s2 }
  0xec   : > { %p3784_p11 = pnand %p3782_p4, %p3768_p9  ;;  %p3790_p7 = scmp.lt.s32.totalorder %s3788_s22, %s3781_s13 }
  0xee   : > { %p3785_p10 = pneg %p3784_p11  ;;  %p3791_p5 = por %p3790_p7, %p3789_p12 }
  0xf0   : > { %p3792_p6 = pnand %p3791_p5, %p3785_p10 }
  0xf2   : > { %3795 = shalt.err (!%p3792_p6)
}
  0xf3   : > { %s5263_s9 = smov 4   ;;  %s5264_s15 = smov 64  }
  0xf4   : > { %3410 = dma.hbm_to_vmem [thread:$0]  (!%p4531_p1), %s4525_s24, 128, %s4535_s25, %s4537_s10, %s5264_s15, %s5264_s15, %s5263_s9  }
  0xf5   : > { %s5265_s4 = sld [smem:[#allocation50_spill]]  ;;  %s661_s23 = scalar_lea.vmem [#allocation8], %s4278_s27 }
  0xf6   : > { %s668_s13 = sshll.u32 %s661_s23, 4  ;;  %s669_s13 = int_to_ptr.vmem [resolvable:$true] %s668_s13 }
  0xfb   : > { %s4572_s16 = scalar_lea.hbm %s5265_s4, %s4281_s28  ;;  %s3801_s10 = scalar_lea.hbm %s5265_s4, 32 }
  0xfc   : > { %s3796_s17 = scalar_lea.hbm %s4572_s16, 16  ;;  %p3802_p13 = scmp.lt.u32.totalorder %s4572_s16, %s5265_s4 }
  0xfd   : > { %p3797_p12 = scmp.ne.s32.totalorder %s4572_s16, %s3796_s17  ;;  %p3803_p1 = scmp.lt.u32.totalorder %s3801_s10, %s3796_s17 }
  0xfe   : > { %p3805_p0 = scmp.lt.u32.totalorder %s3796_s17, %s4572_s16 }
  0xff   : > { %p3799_p2 = pnand %p3797_p12, %p4305_p8  ;;  %p3804_p9 = por %p3803_p1, %p3802_p13 }
 0x101   : > { %p3800_p10 = pneg %p3799_p2  ;;  %p3806_p3 = por %p3805_p0, %p3804_p9 }
 0x103   : > { %p3807_p4 = pnand %p3806_p3, %p3800_p10 }
 0x105   : > { %3810 = shalt.err (!%p3807_p4)
}
 0x106   : > { %s3811_s9 = scalar_lea.vmem %s669_s13, 16  ;;  %s4098_s15 = smov [#allocation8]  }
 0x107   : > { %p3812_p11 = scmp.ne.s32.totalorder %s669_s13, %s3811_s9  ;;  %s3816_s11 = sshll.u32 %s4098_s15, 4  ;;  %s3817_s11 = int_to_ptr.vmem [resolvable:$false] %s3816_s11 }
 0x108   : > { %s3818_s18 = scalar_lea.vmem %s3817_s11, 32  ;;  %p3819_p6 = scmp.lt.s32.totalorder %s669_s13, %s3817_s11 }
 0x109   : > { %p3814_p7 = pnand %p3812_p11, %p4305_p8  ;;  %p3820_p12 = scmp.lt.s32.totalorder %s3818_s18, %s3811_s9 }
 0x10b   : > { %p3815_p5 = pneg %p3814_p7  ;;  %p3821_p2 = por %p3820_p12, %p3819_p6 }
 0x10d   : > { %p3822_p1 = pnand %p3821_p2, %p3815_p5 }
 0x10f   : > { %3825 = shalt.err (!%p3822_p1)
}
 0x110   : > { %p5266_p13 = scmp.ne.s32.totalorder %s5231_s7, 0  ;;  %s5267_s23 = scalar_lea.sflag [#allocation7], %s4275_s26 }
 0x111   : > { %s5268_s8 = sld [smem:[#allocation54_spill]]  ;;  %s711_s10 = scalar_lea.vmem [#allocation11], %s4278_s27 }
 0x112   : > { %3416 = dma.hbm_to_vmem [thread:$0]  (!%p5266_p13), %s4572_s16, 16, %s669_s13, %s5267_s23  }
 0x113   : > { %s718_s24 = sshll.u32 %s711_s10, 4  ;;  %s719_s24 = int_to_ptr.vmem [resolvable:$true] %s718_s24 }
 0x117   : > { %s4598_s22 = scalar_lea.hbm %s5268_s8, %s4281_s28  ;;  %s3831_s16 = scalar_lea.hbm %s5268_s8, 32 }
 0x118   : > { %s3826_s25 = scalar_lea.hbm %s4598_s22, 16  ;;  %p3832_p3 = scmp.lt.u32.totalorder %s4598_s22, %s5268_s8 }
 0x119   : > { %p3827_p10 = scmp.ne.s32.totalorder %s4598_s22, %s3826_s25  ;;  %p3833_p4 = scmp.lt.u32.totalorder %s3831_s16, %s3826_s25 }
 0x11a   : > { %p3835_p7 = scmp.lt.u32.totalorder %s3826_s25, %s4598_s22 }
 0x11b   : > { %p3829_p9 = pnand %p3827_p10, %p4305_p8  ;;  %p3834_p11 = por %p3833_p4, %p3832_p3 }
 0x11d   : > { %p3830_p0 = pneg %p3829_p9  ;;  %p3836_p5 = por %p3835_p7, %p3834_p11 }
 0x11f   : > { %p3837_p6 = pnand %p3836_p5, %p3830_p0 }
 0x121   : > { %3840 = shalt.err (!%p3837_p6)
}
 0x122   : > { %s3841_s18 = scalar_lea.vmem %s719_s24, 16  ;;  %s4099_s23 = smov [#allocation11]  }
 0x123   : > { %p3842_p12 = scmp.ne.s32.totalorder %s719_s24, %s3841_s18  ;;  %s3846_s17 = sshll.u32 %s4099_s23, 4  ;;  %s3847_s17 = int_to_ptr.vmem [resolvable:$false] %s3846_s17 }
 0x124   : > { %s3848_s2 = scalar_lea.vmem %s3847_s17, 32  ;;  %p3849_p10 = scmp.lt.s32.totalorder %s719_s24, %s3847_s17 }
 0x125   : > { %p3844_p2 = pnand %p3842_p12, %p4305_p8  ;;  %p3850_p9 = scmp.lt.s32.totalorder %s3848_s2, %s3841_s18 }
 0x127   : > { %p3845_p1 = pneg %p3844_p2  ;;  %p3851_p13 = por %p3850_p9, %p3849_p10 }
 0x129   : > { %p3852_p3 = pnand %p3851_p13, %p3845_p1 }
 0x12b   : > { %3855 = shalt.err (!%p3852_p3)
}
 0x12c   : > { %p5269_p4 = scmp.ne.s32.totalorder %s5231_s7, 0  ;;  %s5270_s10 = scalar_lea.sflag [#allocation10], %s4275_s26 }
 0x12d   : > { %s5271_s15 = sld [smem:[#allocation58_spill]]  ;;  %s761_s13 = scalar_lea.vmem [#allocation14], %s4278_s27 }
 0x12e   : > { %3422 = dma.hbm_to_vmem [thread:$0]  (!%p5269_p4), %s4598_s22, 16, %s719_s24, %s5270_s10  }
 0x12f   : > { %s768_s11 = sshll.u32 %s761_s13, 4  ;;  %s769_s11 = int_to_ptr.vmem [resolvable:$true] %s768_s11 }
 0x133   : > { %s4624_s16 = scalar_lea.hbm %s5271_s15, %s4281_s28  ;;  %s3861_s22 = scalar_lea.hbm %s5271_s15, 32 }
 0x134   : > { %s3856_s18 = scalar_lea.hbm %s4624_s16, 16  ;;  %p3862_p7 = scmp.lt.u32.totalorder %s4624_s16, %s5271_s15 }
 0x135   : > { %p3857_p13 = scmp.ne.s32.totalorder %s4624_s16, %s3856_s18  ;;  %p3863_p5 = scmp.lt.u32.totalorder %s3861_s22, %s3856_s18 }
 0x136   : > { %p3865_p12 = scmp.lt.u32.totalorder %s3856_s18, %s4624_s16 }
 0x137   : > { %p3859_p0 = pnand %p3857_p13, %p4305_p8  ;;  %p3864_p6 = por %p3863_p5, %p3862_p7 }
 0x139   : > { %p3860_p11 = pneg %p3859_p0  ;;  %p3866_p2 = por %p3865_p12, %p3864_p6 }
 0x13b   : > { %p3867_p1 = pnand %p3866_p2, %p3860_p11 }
 0x13d   : > { %3870 = shalt.err (!%p3867_p1)
}
 0x13e   : > { %s3871_s10 = scalar_lea.vmem %s769_s11, 16  ;;  %s4100_s25 = smov [#allocation14]  }
 0x13f   : > { %p3872_p10 = scmp.ne.s32.totalorder %s769_s11, %s3871_s10  ;;  %s3876_s9 = sshll.u32 %s4100_s25, 4  ;;  %s3877_s9 = int_to_ptr.vmem [resolvable:$false] %s3876_s9 }
 0x140   : > { %s3878_s13 = scalar_lea.vmem %s3877_s9, 32  ;;  %p3879_p13 = scmp.lt.s32.totalorder %s769_s11, %s3877_s9 }
 0x141   : > { %p3874_p9 = pnand %p3872_p10, %p4305_p8  ;;  %p3880_p0 = scmp.lt.s32.totalorder %s3878_s13, %s3871_s10 }
 0x143   : > { %p3875_p3 = pneg %p3874_p9  ;;  %p3881_p4 = por %p3880_p0, %p3879_p13 }
 0x145   : > { %p3882_p5 = pnand %p3881_p4, %p3875_p3 }
 0x147   : > { %3885 = shalt.err (!%p3882_p5)
}
 0x148   : > { %p5272_p7 = scmp.ne.s32.totalorder %s5231_s7, 0  ;;  %s5273_s18 = scalar_lea.sflag [#allocation13], %s4275_s26 }
 0x149   : > { %s5274_s22 = sld [smem:[#allocation60_spill]]  ;;  %s795_s2 = scalar_lea.vmem [#allocation17], %s4278_s27 }
 0x14a   : > { %3428 = dma.hbm_to_vmem [thread:$0]  (!%p5272_p7), %s4624_s16, 16, %s769_s11, %s5273_s18  }
 0x14b   : > { %s802_s10 = sshll.u32 %s795_s2, 4  ;;  %s803_s10 = int_to_ptr.vmem [resolvable:$true] %s802_s10 }
 0x14f   : > { %s5275_s4 = smov %s5274_s22  ;;  %s4650_s24 = scalar_lea.hbm %s5274_s22, %s4281_s28 }
 0x150   : > { %s3886_s25 = scalar_lea.hbm %s4650_s24, 16  ;;  %s3891_s16 = scalar_lea.hbm %s5275_s4, 32 }
 0x151   : > { %p3887_p4 = scmp.ne.s32.totalorder %s4650_s24, %s3886_s25  ;;  %p3892_p12 = scmp.lt.u32.totalorder %s4650_s24, %s5275_s4 }
 0x152   : > { %p3893_p2 = scmp.lt.u32.totalorder %s3891_s16, %s3886_s25  ;;  %p3895_p10 = scmp.lt.u32.totalorder %s3886_s25, %s4650_s24 }
 0x153   : > { %p3889_p11 = pnand %p3887_p4, %p4305_p8 }
 0x154   : > { %p3894_p1 = por %p3893_p2, %p3892_p12 }
 0x155   : > { %p3890_p6 = pneg %p3889_p11 }
 0x156   : > { %p3896_p9 = por %p3895_p10, %p3894_p1 }
 0x158   : > { %p3897_p3 = pnand %p3896_p9, %p3890_p6 }
 0x15a   : > { %3900 = shalt.err (!%p3897_p3)
}
 0x15b   : > { %s3901_s23 = scalar_lea.vmem %s803_s10, 16  ;;  %s4101_s17 = smov [#allocation17]  }
 0x15c   : > { %p3902_p13 = scmp.ne.s32.totalorder %s803_s10, %s3901_s23  ;;  %s3906_s22 = sshll.u32 %s4101_s17, 4  ;;  %s3907_s22 = int_to_ptr.vmem [resolvable:$false] %s3906_s22 }
 0x15d   : > { %s3908_s2 = scalar_lea.vmem %s3907_s22, 32  ;;  %p3909_p4 = scmp.lt.s32.totalorder %s803_s10, %s3907_s22 }
 0x15e   : > { %p3904_p0 = pnand %p3902_p13, %p4305_p8  ;;  %p3910_p11 = scmp.lt.s32.totalorder %s3908_s2, %s3901_s23 }
 0x160   : > { %p3905_p5 = pneg %p3904_p0  ;;  %p3911_p7 = por %p3910_p11, %p3909_p4 }
 0x162   : > { %p3912_p2 = pnand %p3911_p7, %p3905_p5 }
 0x164   : > { %3915 = shalt.err (!%p3912_p2)
}
 0x165   : > { %p5276_p12 = scmp.ne.s32.totalorder %s5231_s7, 0  ;;  %s5277_s25 = scalar_lea.sflag [#allocation16], %s4275_s26 }
 0x166   : > { %s5278_s16 = sld [smem:[#allocation62_spill]]  ;;  %s833_s18 = scalar_lea.vmem [#allocation20], %s4278_s27 }
 0x167   : > { %3434 = dma.hbm_to_vmem [thread:$0]  (!%p5276_p12), %s4650_s24, 16, %s803_s10, %s5277_s25  }
 0x168   : > { %s840_s23 = sshll.u32 %s833_s18, 4  ;;  %s841_s23 = int_to_ptr.vmem [resolvable:$true] %s840_s23 }
 0x16c   : > { %s4676_s11 = scalar_lea.hbm %s5278_s16, %s4281_s28  ;;  %s3921_s24 = scalar_lea.hbm %s5278_s16, 32 }
 0x16d   : > { %s3916_s17 = scalar_lea.hbm %s4676_s11, 16  ;;  %p3922_p10 = scmp.lt.u32.totalorder %s4676_s11, %s5278_s16 }
 0x16e   : > { %p3917_p7 = scmp.ne.s32.totalorder %s4676_s11, %s3916_s17  ;;  %p3923_p9 = scmp.lt.u32.totalorder %s3921_s24, %s3916_s17 }
 0x16f   : > { %p3925_p13 = scmp.lt.u32.totalorder %s3916_s17, %s4676_s11 }
 0x170   : > { %p3919_p6 = pnand %p3917_p7, %p4305_p8  ;;  %p3924_p3 = por %p3923_p9, %p3922_p10 }
 0x172   : > { %p3920_p1 = pneg %p3919_p6  ;;  %p3926_p0 = por %p3925_p13, %p3924_p3 }
 0x174   : > { %p3927_p5 = pnand %p3926_p0, %p3920_p1 }
 0x176   : > { %3930 = shalt.err (!%p3927_p5)
}
 0x177   : > { %s3931_s27 = scalar_lea.vmem %s841_s23, 16  ;;  %s4102_s28 = smov [#allocation20]  }
 0x178   : > { %p3932_p4 = scmp.ne.s32.totalorder %s841_s23, %s3931_s27  ;;  %s3936_s9 = sshll.u32 %s4102_s28, 4  ;;  %s3937_s9 = int_to_ptr.vmem [resolvable:$false] %s3936_s9 }
 0x179   : > { %s3938_s13 = scalar_lea.vmem %s3937_s9, 32  ;;  %p3939_p7 = scmp.lt.s32.totalorder %s841_s23, %s3937_s9 }
 0x17a   : > { %p3934_p11 = pnand %p3932_p4, %p4305_p8  ;;  %p3940_p6 = scmp.lt.s32.totalorder %s3938_s13, %s3931_s27 }
 0x17c   : > { %p3935_p2 = pneg %p3934_p11  ;;  %p3941_p12 = por %p3940_p6, %p3939_p7 }
 0x17e   : > { %p3942_p9 = pnand %p3941_p12, %p3935_p2 }
 0x180   : > { %3945 = shalt.err (!%p3942_p9)
}
 0x181   : > { %p5279_p10 = scmp.ne.s32.totalorder %s5231_s7, 0  ;;  %s5280_s18 = scalar_lea.sflag [#allocation19], %s4275_s26 }
 0x182   : > { %s5281_s17 = sld [smem:[#allocation39_spill]] }
 0x183   : > { %3440 = dma.hbm_to_vmem [thread:$0]  (!%p5279_p10), %s4676_s11, 16, %s841_s23, %s5280_s18  }
 0x188   : > { %p5282_p1 = scmp.ne.s32.totalorder %s5281_s17, 0 }
 0x189   : > { %s4701_s29 = sand.u32 (!%p5282_p1), 1, %s4064_s1   ;;  %p5283_p8 = scmp.ne.s32.totalorder (!%p5282_p1), %s5251_s14, 0 }
 0x18a   : > { %863 = sbr.rel (%p5282_p1) target bundleno = 4493 (0x118d), region = 96  ;;  %s3071_s22 = sshll.u32 (!%p5282_p1), %s4701_s29, 3 }
 0x18b   : > { %s866_s2 = scalar_lea.sflag (!%p5282_p1), [#allocation4], %s4701_s29  ;;  %s4705_s24 = scalar_lea.vmem (!%p5282_p1), [#allocation3], %s3071_s22 }
 0x191   : > { %4019 = dma.done.wait (%p5283_p8), %s866_s2, 128  }
 0x192   : > { %4021 = vsyncadd (%p5283_p8), %s866_s2, 4294967168  ;;  %s874_s7 = sand.u32 1, %s4456_s12   ;;  %s4713_s26 = sand.u32 1, %s4052_s30  }
 0x193   : > { %s875_s11 = scalar_lea.sflag [#allocation7], %s874_s7  ;;  %p5284_p12 = scmp.ne.s32.totalorder %s5253_s6, 0 }
 0x195   : > { %4023 = dma.done.wait (%p5284_p12), %s875_s11, 32  }
 0x196   : > { %4025 = vsyncadd (%p5284_p12), %s875_s11, 4294967264  ;;  %s891_s14 = scalar_lea.sflag [#allocation10], %s874_s7 }
 0x197   : > { %4027 = dma.done.wait (%p5284_p12), %s891_s14, 32  }
 0x198   : > { %4029 = vsyncadd (%p5284_p12), %s891_s14, 4294967264  ;;  %s907_s27 = scalar_lea.sflag [#allocation13], %s874_s7 }
 0x199   : > { %4031 = dma.done.wait (%p5284_p12), %s907_s27, 32  }
 0x19a   : > { %4033 = vsyncadd (%p5284_p12), %s907_s27, 4294967264  ;;  %s923_s13 = scalar_lea.sflag [#allocation16], %s874_s7 }
 0x19b   : > { %4035 = dma.done.wait (%p5284_p12), %s923_s13, 32  }
 0x19c   : > { %4037 = vsyncadd (%p5284_p12), %s923_s13, 4294967264  ;;  %s3072_s17 = sshll.u32 %s4713_s26, 4  ;;  %s939_s2 = scalar_lea.sflag [#allocation19], %s874_s7 }
 0x19d   : > { %s4740_s11 = scalar_lea.vmem [#allocation18], %s3072_s17 }
 0x19e   : > { %4039 = dma.done.wait (%p5284_p12), %s939_s2, 272  }
 0x19f   : > { %4041 = vsyncadd (%p5284_p12), %s939_s2, 4294967024  ;;  %s5285_s14 = sld [smem:[#allocation35_spill]]  ;;  %s5286_s27 = sld [smem:[#allocation34_spill]] }
 0x1a0   : > { %s3073_s18 = sshll.u32 %s4701_s29, 4  ;;  %s5287_s6 = sld [smem:[#allocation47_spill]] }
 0x1a1   : > { %s5288_s12 = sld [smem:[#allocation48_spill]]  ;;  %s5289_s8 = sld [smem:[#allocation51_spill]] }
 0x1a2   : > { %s5292_s28 = sld [smem:[#allocation57_spill]]  ;;  %s5293_s4 = sld [smem:[#allocation63_spill]] }
 0x1a3   : > { %s5294_s1 = sld [smem:[#allocation64_spill]]  ;;  %s4794_s19 = scalar_lea.vmem [#allocation21], %s3073_s18 }
 0x1a5   : > { %s3074_s9 = sshll.u32 %s5285_s14, 1  ;;  %p1101_p13 = scmp.lt.s32.totalorder %s5286_s27, 1 }
 0x1a6   : > { %p1088_p3 = scmp.lt.s32.totalorder %s3074_s9, 3  ;;  %p3090_p0 = scmp.ne.s32.totalorder %s5286_s27, 0 }
 0x1a7   : > { %s4750_s13 = scalar_select %p1101_p13, %s5286_s27, 1 }
 0x1a8   : > { %s5330_s9 = smov (!%p1088_p3, %s3074_s9), 3  ;;  %v3166_v0 = vld [vmem:[%s4705_s24] sm:$0xff] (!%p3090_p0)   ;;  %vm1139_vm0 = vcmask (!%p3090_p0), 261120  }
 0x1a9   : > { %s3157_s7 = sshll.u32 %s5330_s9, 3  ;;  %s3159_s14 = sshll.u32 %s4750_s13, 4  ;;  %v3167_v1 = vunpack.c.l.bf16 (!%p3090_p0), %v3166_v0  ;;  %v3168_v2 = vunpack.c.h.bf16 (!%p3090_p0), %v3166_v0 }
 0x1aa   : > { %s4755_s2 = scalar_lea.vmem %s5287_s6, %s3157_s7  ;;  %s4760_s10 = scalar_lea.vmem %s5288_s12, %s3157_s7 }
 0x1ab   : > { %s3163_s23 = sshll.u32 %s4750_s13, 6  ;;  %s4767_s15 = scalar_lea.vmem %s5289_s8, %s3159_s14  ;;  %1140 = vst.msk [vmem:[#allocation2] sm:$0xff] (!%p3090_p0), %vm1139_vm0, %v3167_v1  ;;  %1141 = vst.msk [vmem:[#allocation2 + $0x8] sm:$0xff] (!%p3090_p0), %vm1139_vm0, %v3168_v2 }
 0x1ac   : > { %s5290_s9 = sld [smem:[#allocation53_spill]]  ;;  %s5291_s6 = sld [smem:[#allocation55_spill]] }
 0x1ad   : > { %s4782_s7 = scalar_lea.vmem %s5292_s28, %s3159_s14  ;;  %s4787_s8 = scalar_lea.vmem %s5293_s4, %s3163_s23 }
 0x1ae   : > { %s1128_s16 = scalar_lea.vmem %s5294_s1, %s4750_s13  ;;  %1134 = sbr.rel (%p3090_p0) target bundleno = 437 (0x1b5), region = 144 }
 0x1b2   : > { %s4772_s20 = scalar_lea.vmem %s5290_s9, %s3159_s14  ;;  %s4777_s30 = scalar_lea.vmem %s5291_s6, %s3159_s14 }
 0x1b3   : > { %s950_s9 = scalar_lea.vmem [#allocation20], %s4713_s26 }
 0x1b5 PF: > { %v4798_v3 = vld [vmem:[#allocation2] sm:$0xff]  ;;  %vm1146_vm1 = vcmask 261120   ;;  %v4800_v4 = vld [vmem:[#allocation2 + $0x8] sm:$0xff]  ;;  %v4103_v18 = vmov 0.0   ;;  %vm4104_vm2 = vmmov 0   ;;  %s5295_s21 = scalar_lea.vmem [#allocation6], %s4713_s26 }
 0x1b6   : > { %v1147_v5 = vsel %vm1146_vm1, %v4798_v3, 0.0  ;;  %v1150_v6 = vsel %vm1146_vm1, %v4800_v4, 0.0  ;;  %v3546_v17 = vld [vmem:[%s4767_s15] sm:$0xff]   ;;  %3227 = vmatprep.subr.bf16.mxu0 %v4103_v18  ;;  %3251 = vmatprep.subr.bf16.mxu1 %v4103_v18  ;;  %v3547_v19 = vld [vmem:[%s4767_s15 + $0x8] sm:$0xff]   ;;  %s5296_s3 = scalar_lea.vmem [#allocation8], %s4713_s26  ;;  %vm1448_vm3 = vcmask 64512  }
 0x1b7   : > { %1148 = vadd.xlane.f32.xlu0 %v1147_v5  ;;  %3228 = vmatpush3.bf16.msra.mxu0 %v3546_v17  ;;  %v3548_v20 = vld [vmem:[%s4772_s20] sm:$0xff]   ;;  %v3549_v39 = vld [vmem:[%s4772_s20 + $0x8] sm:$0xff]   ;;  %s5298_s20 = scalar_lea.vmem [#allocation9], %s4713_s26  ;;  %s5299_s0 = scalar_lea.vmem [#allocation12], %s4713_s26  ;;  %vm1541_vm4 = vcmask 130048   ;;  %vm2342_vm5 = vcmask 195584  }
 0x1b8   : > { %3231 = vmatprep.mubr.msk.bf16.mxu0 %vm4104_vm2, %v4103_v18  ;;  %3229 = vmatprep.subr.bf16.mxu0 %v4103_v18  ;;  %v3091_v29 = vld [vmem:[%s5295_s21] ss:$0 sm:$0xff]  ;;  %v3551_v40 = vld [vmem:[%s4755_s2 + $0x8] sm:$0xff]   ;;  %s4105_s15 = smov 120   ;;  %s4106_s24 = smov 112  }
 0x1b9   : > { %3253 = vmatprep.mubr.msk.bf16.mxu1 %vm4104_vm2, %v4103_v18  ;;  %v3092_v33 = vld [vmem:[%s5296_s3] ss:$0 sm:$0xff]  ;;  %v3553_v42 = vld [vmem:[%s4777_s30 + $0x8] sm:$0xff]   ;;  %s4107_s23 = smov 104   ;;  %s4109_s18 = smov 16  }
 0x1ba   : > { %v3550_v37 = vld [vmem:[%s4755_s2] sm:$0xff]   ;;  %v3555_v44 = vld [vmem:[%s4760_s10 + $0x8] sm:$0xff]   ;;  %s4110_s27 = smov 24   ;;  %s5300_s2 = scalar_lea.vmem [#allocation14], %s4713_s26 }
 0x1bb   : > { %1151 = vadd.xlane.f32.xlu0 %v1150_v6  ;;  %3230 = vmatpush3.bf16.msra.mxu0 %v3547_v19  ;;  %v3552_v41 = vld [vmem:[%s4777_s30] sm:$0xff]   ;;  %s5297_s30 = scalar_lea.vmem [#allocation11], %s4713_s26  ;;  %s5301_s14 = scalar_lea.vmem [#allocation15], %s4713_s26 }
 0x1bc   : > { %3235 = vmatprep.subr.bf16.mxu0 %v3548_v20  ;;  %v3554_v43 = vld [vmem:[%s4760_s10] sm:$0xff]   ;;  %s4108_s10 = smov 8   ;;  %s5304_s6 = sld [smem:[#allocation34_spill]] }
 0x1bd   : > { %v3097_v50 = vld [vmem:[%s5297_s30] ss:$0 sm:$0xff] }
 0x1be   : > { %v3093_v60 = vld [vmem:[%s5298_s20] ss:$0 sm:$0xff] }
 0x1bf   : > { %v3104_v5 = vld [vmem:[%s5299_s0] ss:$0 sm:$0xff] }
 0x1c2   : > { %p3149_p5 = scmp.ne.s32.totalorder %s5304_s6, 1 }
 0x244   : > { %v1149_v7 = vpop.xlane.xlu0 %1148 }
 0x245   : > { %v1154_v8 = vmul.f32 0.03125, %v1149_v7 }
 0x247   : > { %v1156_v9 = vsub.f32 %v4798_v3, %v1154_v8 }
 0x248   : > { %v1152_v10 = vpop.xlane.xlu0 %1151 }
 0x249   : > { %v1155_v11 = vmul.f32 0.03125, %v1152_v10  ;;  %v1158_v12 = vmul.f32 %v1156_v9, %v1156_v9 }
 0x24b   : > { %v1157_v13 = vsub.f32 %v4800_v4, %v1155_v11  ;;  %v1160_v14 = vsel %vm1146_vm1, %v1158_v12, 0.0 }
 0x24c   : > { %1161 = vadd.xlane.f32.xlu1 %v1160_v14 }
 0x24d   : > { %v1159_v15 = vmul.f32 %v1157_v13, %v1157_v13 }
 0x24f   : > { %v1163_v16 = vsel %vm1146_vm1, %v1159_v15, 0.0 }
 0x250   : > { %1164 = vadd.xlane.f32.xlu1 %v1163_v16 }
 0x2d9   : > { %v1162_v21 = vpop.xlane.xlu1 %1161 }
 0x2da   : > { %v1166_v22 = vmul.f32 0.03125, %v1162_v21 }
 0x2dc   : > { %v1168_v23 = vadd.f32 1e-05, %v1166_v22 }
 0x2dd   : > { %v1165_v24 = vpop.xlane.xlu1 %1164 }
 0x2de   : > { %3568 = vrsqrt.f32 %v1168_v23  ;;  %v1167_v25 = vmul.f32 0.03125, %v1165_v24 }
 0x2e0   : > { %v1169_v26 = vadd.f32 1e-05, %v1167_v25 }
 0x2e2   : > { %3570 = vrsqrt.f32 %v1169_v26 }
 0x2e8   : > { %v3569_v27 = vpop.eup %3568 }
 0x2e9   : > { %v1172_v28 = vmul.f32 %v3569_v27, %v1156_v9 }
 0x2eb   : > { %v1180_v32 = vmul.f32 %v3091_v29, %v1172_v28 }
 0x2ec   : > { %v3571_v30 = vpop.eup %3570 }
 0x2ed   : > { %v1173_v31 = vmul.f32 %v3571_v30, %v1157_v13  ;;  %v1188_v35 = vadd.f32 %v3092_v33, %v1180_v32 }
 0x2ef   : > { %v1181_v34 = vmul.f32 %v3091_v29, %v1173_v31 }
 0x2f1   : > { %v1189_v36 = vadd.f32 %v3092_v33, %v1181_v34 }
 0x2f3   : > { %v1198_v38 = vpack.c.bf16 %v1189_v36, %v1188_v35 }
 0x2f5   : > { %3232 = vmatmul.mubr.msk.bf16.vlgmr.msra.gmra.mrb[0].mxu0 %vm1146_vm1, %v1198_v38 }
 0x2f6   : > { %3236 = vmatpush3.bf16.msra.mxu0 %v3548_v20  ;;  %3239 = vmatprep.mubr.msk.bf16.mxu0 %vm1146_vm1, %v3550_v37 }
 0x2f7   : > { %3237 = vmatprep.subr.bf16.mxu0 %v3549_v39 }
 0x2fa   : > { %3238 = vmatpush3.bf16.msra.mxu0 %v3549_v39 }
 0x2fb   : > { %3243 = vmatprep.subr.bf16.mxu0 %v3552_v41 }
 0x2fd   : > { %3240 = vmatmul.mubr.msk.bf16.vlgmr.msra.gmra.mrb[4].mxu0 %vm1146_vm1, %v3551_v40 }
 0x2fe   : > { %3244 = vmatpush3.bf16.msra.mxu0 %v3552_v41  ;;  %3247 = vmatprep.mubr.msk.bf16.mxu0 %vm1146_vm1, %v3554_v43 }
 0x2ff   : > { %3245 = vmatprep.subr.bf16.mxu0 %v3553_v42 }
 0x302   : > { %3246 = vmatpush3.bf16.msra.mxu0 %v3553_v42 }
 0x303   : > { %3257 = vmatprep.subr.bf16.mxu0 %v4103_v18 }
 0x305   : > { %3248 = vmatmul.mubr.msk.bf16.vlgmr.msra.gmra.mrb[8].mxu0 %vm1146_vm1, %v3555_v44 }
 0x306   : > { %3259 = vmatprep.mubr.msk.bf16.mxu0 %vm4104_vm2, %v4103_v18 }
 0x3c8   : > { %v1259_v45 = vpop.f32.mrb[0].mxu0 }
 0x3c9   : > { %v3233_v46 = vpop.f32.mrb[1].mxu0  ;;  %v1260_v0 = vadd.f32 %v3093_v60, %v1259_v45 }
 0x3ca   : > { %v1262_v47 = vpop.f32.mrb[2].mxu0 }
 0x3cb   : > { %v3234_v48 = vpop.f32.mrb[3].mxu0  ;;  %v1263_v63 = vadd.f32 %v3093_v60, %v1262_v47  ;;  %v4855_v2 = vpack.c.bf16 %v1260_v0, %v1260_v0 }
 0x3cd   : > { %v4853_v1 = vpack.c.bf16 %v1263_v63, %v1263_v63 }
 0x3d0   : > { %v3241_v49 = vpop.f32.mrb[4].mxu0 }
 0x3d1   : > { %v1339_v51 = vpop.f32.mrb[5].mxu0  ;;  %v1348_v53 = vadd.f32 %v3241_v49, %v3097_v50 }
 0x3d2   : > { %v3242_v52 = vpop.f32.mrb[6].mxu0  ;;  %v1340_v56 = vadd.f32 %v3097_v50, %v1339_v51 }
 0x3d3   : > { %v1351_v54 = vadd.f32 %v3242_v52, %v3097_v50  ;;  %v1342_v55 = vpop.f32.mrb[7].mxu0 }
 0x3d4   : > { %v1343_v57 = vadd.f32 %v3097_v50, %v1342_v55 }
 0x3d5   : > { %v4841_v58 = vpack.c.bf16 %v1351_v54, %v1348_v53 }
 0x3d6   : > { %v4843_v59 = vpack.c.bf16 %v1343_v57, %v1340_v56 }
 0x3d7   : > { %v1499_v61 = vsel %vm1448_vm3, %v4841_v58, 0 }
 0x3d8   : > { %3258 = vmatpush3.bf16.xpose.msra.mxu0 %v1499_v61  ;;  %v1453_v62 = vsel %vm1448_vm3, %v4843_v59, 0  ;;  %v3249_v6 = vpop.f32.mrb[8].mxu0 }
 0x3d9   : > { %3252 = vmatpush3.bf16.xpose.msra.mxu1 %v1453_v62  ;;  %3269 = vmatprep.subr.bf16.mxu0 %v4103_v18  ;;  %v1436_v7 = vadd.f32 %v3249_v6, %v3104_v5  ;;  %v1427_v8 = vpop.f32.mrb[9].mxu0 }
 0x3da   : > { %3263 = vmatprep.subr.bf16.mxu1 %v4103_v18  ;;  %v1428_v9 = vadd.f32 %v3104_v5, %v1427_v8  ;;  %v3250_v10 = vpop.f32.mrb[10].mxu0 }
 0x3db   : > { %v1439_v11 = vadd.f32 %v3250_v10, %v3104_v5  ;;  %v1430_v12 = vpop.f32.mrb[11].mxu0 }
 0x3dc   : > { %v1431_v13 = vadd.f32 %v3104_v5, %v1430_v12 }
 0x3dd   : > { %v4867_v14 = vpack.c.bf16 %v1439_v11, %v1436_v7 }
 0x3de   : > { %v4869_v15 = vpack.c.bf16 %v1431_v13, %v1428_v9 }
 0x3df   : > { %3260 = vmatmul.mubr.msk.bf16.vlgmr.msra.gmra.mrb[12].mxu0 %vm1448_vm3, %v4853_v1 }
 0x3e0   : > { %3254 = vmatmul.mubr.msk.bf16.vlgmr.msra.gmra.mrb[0].mxu1 %vm1448_vm3, %v4855_v2  ;;  %3271 = vmatprep.mubr.msk.bf16.mxu0 %vm4104_vm2, %v4103_v18 }
 0x3e1   : > { %3265 = vmatprep.mubr.msk.bf16.mxu1 %vm4104_vm2, %v4103_v18  ;;  %3270 = vmatpush3.bf16.msra.mxu0 %v4867_v14 }
 0x3e2   : > { %3264 = vmatpush3.bf16.msra.mxu1 %v4869_v15  ;;  %3281 = vmatprep.subr.bf16.mxu0 %v4103_v18 }
 0x3e3   : > { %3275 = vmatprep.subr.bf16.mxu1 %v4103_v18 }
 0x4b2   : > { %v1535_v16 = vpop.f32.mrb[12].mxu0 }
 0x4b3   : > { %v1489_v17 = vpop.f32.mrb[0].mxu1  ;;  %v3261_v19 = vpop.f32.mrb[13].mxu0  ;;  %v1545_v20 = vsel %vm1541_vm4, %v1535_v16, -inf }
 0x4b4   : > { %1546 = vmax.xlane.f32.xlu1 %v1545_v20  ;;  %v3255_v21 = vpop.f32.mrb[1].mxu1  ;;  %v1538_v22 = vpop.f32.mrb[14].mxu0  ;;  %v1542_v23 = vsel %vm1541_vm4, %v1489_v17, -inf }
 0x4b5   : > { %v3262_v24 = vpop.f32.mrb[15].mxu0  ;;  %1543 = vmax.xlane.f32.xlu0 %v1542_v23  ;;  %v1492_v25 = vpop.f32.mrb[2].mxu1 }
 0x4b6   : > { %v3256_v26 = vpop.f32.mrb[3].mxu1 }
 0x541   : > { %v1547_v27 = vpop.xlane.xlu1 %1546 }
 0x542   : > { %v1549_v28 = vsub.f32 %v1535_v16, %v1547_v27  ;;  %v1544_v29 = vpop.xlane.xlu0 %1543 }
 0x543   : > { %v1548_v30 = vsub.f32 %v1489_v17, %v1544_v29 }
 0x544   : > { %v1552_v31 = vmul.f32 1.442695, %v1549_v28 }
 0x545   : > { %v1550_v32 = vmul.f32 1.442695, %v1548_v30 }
 0x546   : > { %3572 = vpow2.f32 %v1552_v31 }
 0x547   : > { %3574 = vpow2.f32 %v1550_v32 }
 0x550   : > { %v3573_v33 = vpop.eup %3572 }
 0x551   : > { %v3575_v34 = vpop.eup %3574  ;;  %v1557_v35 = vsel %vm1541_vm4, %v3573_v33, 0.0 }
 0x552   : > { %1558 = vadd.xlane.f32.xlu1 %v1557_v35  ;;  %v1554_v36 = vsel %vm1541_vm4, %v3575_v34, 0.0 }
 0x553   : > { %1555 = vadd.xlane.f32.xlu0 %v1554_v36 }
 0x563   : > { %1710 = vrot.lane.b32.xlu1 %v4841_v58, %s4105_s15 }
 0x567   : > { %1655 = vrot.lane.b32.xlu1 %v4855_v2, %s4105_s15 }
 0x569   : > { %1658 = vrot.lane.b32.xlu0 %v4843_v59, %s4105_s15 }
 0x56b   : > { %1707 = vrot.lane.b32.xlu1 %v4853_v1, %s4105_s15 }
 0x5df   : > { %v1559_v37 = vpop.xlane.xlu1 %1558 }
 0x5e0   : > { %3576 = vrcp.f32 %v1559_v37  ;;  %v1556_v38 = vpop.xlane.xlu0 %1555 }
 0x5e1   : > { %3578 = vrcp.f32 %v1556_v38 }
 0x5e3   : > { %v1711_v40 = vpop.permute.xlu1 %1710 }
 0x5e4   : > { %v1659_v44 = vpop.permute.xlu0 %1658  ;;  %v1716_v47 = vsel %vm1448_vm3, %v1711_v40, 0 }
 0x5e5   : > { %v1664_v48 = vsel %vm1448_vm3, %v1659_v44, 0 }
 0x5e7   : > { %v1656_v49 = vpop.permute.xlu1 %1655 }
 0x5ea   : > { %v3577_v39 = vpop.eup %3576 }
 0x5eb   : > { %v3579_v41 = vpop.eup %3578  ;;  %v1563_v42 = vmul.f32 %v3577_v39, %v3573_v33  ;;  %v1708_v50 = vpop.permute.xlu1 %1707 }
 0x5ec   : > { %v1562_v43 = vmul.f32 %v3579_v41, %v3575_v34 }
 0x5ed   : > { %v1565_v45 = vpack.c.bf16 %v1563_v42, %v1563_v42 }
 0x5ee   : > { %v1564_v46 = vpack.c.bf16 %v1562_v43, %v1562_v43 }
 0x5ef   : > { %3272 = vmatmul.mubr.msk.bf16.vlgmr.msra.gmra.mrb[16].mxu0 %vm1541_vm4, %v1565_v45 }
 0x5f0   : > { %3282 = vmatpush3.bf16.xpose.msra.mxu0 %v1716_v47  ;;  %3266 = vmatmul.mubr.msk.bf16.vlgmr.msra.gmra.mrb[4].mxu1 %vm1541_vm4, %v1564_v46 }
 0x5f1   : > { %3276 = vmatpush3.bf16.xpose.msra.mxu1 %v1664_v48  ;;  %3283 = vmatprep.mubr.msk.bf16.mxu0 %vm4104_vm2, %v4103_v18 }
 0x5f2   : > { %3277 = vmatprep.mubr.msk.bf16.mxu1 %vm4104_vm2, %v4103_v18  ;;  %3293 = vmatprep.subr.bf16.mxu0 %v4103_v18 }
 0x5f3   : > { %3287 = vmatprep.subr.bf16.mxu1 %v4103_v18 }
 0x5f7   : > { %3284 = vmatmul.mubr.msk.bf16.vlgmr.msra.gmra.mrb[20].mxu0 %vm1448_vm3, %v1708_v50 }
 0x5f8   : > { %3278 = vmatmul.mubr.msk.bf16.vlgmr.msra.gmra.mrb[8].mxu1 %vm1448_vm3, %v1656_v49  ;;  %3295 = vmatprep.mubr.msk.bf16.mxu0 %vm4104_vm2, %v4103_v18 }
 0x5f9   : > { %3289 = vmatprep.mubr.msk.bf16.mxu1 %vm4104_vm2, %v4103_v18 }
 0x6c2   : > { %v4903_v51 = vpop.f32.mrb[16].mxu0 }
 0x6c3   : > { %v4905_v52 = vpop.f32.mrb[4].mxu1  ;;  %v3273_v53 = vpop.f32.mrb[17].mxu0 }
 0x6c4   : > { %v3267_v54 = vpop.f32.mrb[5].mxu1  ;;  %v1649_v55 = vpop.f32.mrb[18].mxu0 }
 0x6c5   : > { %v1606_v56 = vpop.f32.mrb[6].mxu1  ;;  %v3274_v57 = vpop.f32.mrb[19].mxu0 }
 0x6c6   : > { %v3268_v60 = vpop.f32.mrb[7].mxu1 }
 0x6ca   : > { %v1752_v61 = vpop.f32.mrb[20].mxu0 }
 0x6cb   : > { %v1700_v62 = vpop.f32.mrb[8].mxu1  ;;  %v3285_v63 = vpop.f32.mrb[21].mxu0  ;;  %v1761_v0 = vsel %vm1541_vm4, %v1752_v61, -inf }
 0x6cc   : > { %1762 = vmax.xlane.f32.xlu1 %v1761_v0  ;;  %v3279_v5 = vpop.f32.mrb[9].mxu1  ;;  %v1755_v6 = vpop.f32.mrb[22].mxu0  ;;  %v1758_v7 = vsel %vm1541_vm4, %v1700_v62, -inf }
 0x6cd   : > { %v3286_v8 = vpop.f32.mrb[23].mxu0  ;;  %1759 = vmax.xlane.f32.xlu0 %v1758_v7  ;;  %v1703_v9 = vpop.f32.mrb[10].mxu1 }
 0x6ce   : > { %v3280_v10 = vpop.f32.mrb[11].mxu1 }
 0x6dd   : > { %1830 = vrot.lane.b32.xlu1 %v4867_v14, %s4105_s15 }
 0x6e1   : > { %1880 = vrot.lane.b32.xlu1 %v4843_v59, %s4106_s24 }
 0x6e5   : > { %1930 = vrot.lane.b32.xlu1 %v4841_v58, %s4106_s24 }
 0x6e9   : > { %1928 = vrot.lane.b32.xlu1 %v4853_v1, %s4106_s24 }
 0x759   : > { %v1763_v11 = vpop.xlane.xlu1 %1762 }
 0x75a   : > { %v1765_v12 = vsub.f32 %v1752_v61, %v1763_v11  ;;  %v1760_v13 = vpop.xlane.xlu0 %1759 }
 0x75b   : > { %v1764_v16 = vsub.f32 %v1700_v62, %v1760_v13 }
 0x75c   : > { %v1768_v17 = vmul.f32 1.442695, %v1765_v12 }
 0x75d   : > { %v1766_v19 = vmul.f32 1.442695, %v1764_v16  ;;  %v1831_v20 = vpop.permute.xlu1 %1830 }
 0x75e   : > { %3580 = vpow2.f32 %v1768_v17  ;;  %3294 = vmatpush3.bf16.msra.mxu0 %v1831_v20 }
 0x75f   : > { %3305 = vmatprep.subr.bf16.mxu0 %v4103_v18  ;;  %3582 = vpow2.f32 %v1766_v19 }
 0x761   : > { %v1881_v27 = vpop.permute.xlu1 %1880 }
 0x762   : > { %v1886_v37 = vsel %vm1448_vm3, %v1881_v27, 0 }
 0x765   : > { %v1931_v31 = vpop.permute.xlu1 %1930 }
 0x766   : > { %v1936_v34 = vsel %vm1448_vm3, %v1931_v31, 0 }
 0x768   : > { %v3581_v21 = vpop.eup %3580 }
 0x769   : > { %v1773_v22 = vsel %vm1541_vm4, %v3581_v21, 0.0  ;;  %v3583_v23 = vpop.eup %3582  ;;  %v1929_v38 = vpop.permute.xlu1 %1928 }
 0x76a   : > { %1774 = vadd.xlane.f32.xlu0 %v1773_v22  ;;  %v1770_v24 = vsel %vm1541_vm4, %v3583_v23, 0.0 }
 0x76e   : > { %1771 = vadd.xlane.f32.xlu0 %v1770_v24 }
 0x784   : > { %1783 = vrot.lane.b32.xlu0 %v4869_v15, %s4105_s15 }
 0x788   : > { %1878 = vrot.lane.b32.xlu0 %v4855_v2, %s4106_s24 }
 0x7f7   : > { %v1775_v25 = vpop.xlane.xlu0 %1774 }
 0x7f8   : > { %3584 = vrcp.f32 %v1775_v25 }
 0x7fb   : > { %v1772_v26 = vpop.xlane.xlu0 %1771 }
 0x7fc   : > { %3586 = vrcp.f32 %v1772_v26 }
 0x7ff   : > { %v1784_v28 = vpop.permute.xlu0 %1783 }
 0x800   : > { %3288 = vmatpush3.bf16.msra.mxu1 %v1784_v28 }
 0x801   : > { %3299 = vmatprep.subr.bf16.mxu1 %v4103_v18 }
 0x802   : > { %v3585_v29 = vpop.eup %3584 }
 0x803   : > { %v1779_v30 = vmul.f32 %v3585_v29, %v3581_v21  ;;  %v1879_v39 = vpop.permute.xlu0 %1878 }
 0x805   : > { %v1781_v32 = vpack.c.bf16 %v1779_v30, %v1779_v30 }
 0x806   : > { %v3587_v33 = vpop.eup %3586 }
 0x807   : > { %v1778_v35 = vmul.f32 %v3587_v33, %v3583_v23  ;;  %3296 = vmatmul.mubr.msk.bf16.vlgmr.msra.gmra.mrb[24].mxu0 %vm1541_vm4, %v1781_v32 }
 0x808   : > { %3306 = vmatpush3.bf16.xpose.msra.mxu0 %v1936_v34  ;;  %3307 = vmatprep.mubr.msk.bf16.mxu0 %vm4104_vm2, %v4103_v18 }
 0x809   : > { %v1780_v36 = vpack.c.bf16 %v1778_v35, %v1778_v35  ;;  %3317 = vmatprep.subr.bf16.mxu0 %v4103_v18 }
 0x80b   : > { %3290 = vmatmul.mubr.msk.bf16.vlgmr.msra.gmra.mrb[12].mxu1 %vm1541_vm4, %v1780_v36 }
 0x80c   : > { %3300 = vmatpush3.bf16.xpose.msra.mxu1 %v1886_v37  ;;  %3301 = vmatprep.mubr.msk.bf16.mxu1 %vm4104_vm2, %v4103_v18 }
 0x80d   : > { %3311 = vmatprep.subr.bf16.mxu1 %v4103_v18 }
 0x80f   : > { %3308 = vmatmul.mubr.msk.bf16.vlgmr.msra.gmra.mrb[28].mxu0 %vm1448_vm3, %v1929_v38 }
 0x810   : > { %3319 = vmatprep.mubr.msk.bf16.mxu0 %vm4104_vm2, %v4103_v18 }
 0x813   : > { %3302 = vmatmul.mubr.msk.bf16.vlgmr.msra.gmra.mrb[16].mxu1 %vm1448_vm3, %v1879_v39 }
 0x814   : > { %3313 = vmatprep.mubr.msk.bf16.mxu1 %vm4104_vm2, %v4103_v18 }
 0x8da   : > { %v4941_v40 = vpop.f32.mrb[24].mxu0 }
 0x8db   : > { %v3297_v41 = vpop.f32.mrb[25].mxu0 }
 0x8dc   : > { %v1873_v42 = vpop.f32.mrb[26].mxu0 }
 0x8dd   : > { %v3298_v43 = vpop.f32.mrb[27].mxu0 }
 0x8de   : > { %v4943_v44 = vpop.f32.mrb[12].mxu1 }
 0x8df   : > { %v3291_v45 = vpop.f32.mrb[13].mxu1 }
 0x8e0   : > { %v1826_v46 = vpop.f32.mrb[14].mxu1 }
 0x8e1   : > { %v3292_v47 = vpop.f32.mrb[15].mxu1 }
 0x8e2   : > { %v1972_v48 = vpop.f32.mrb[28].mxu0  ;;  %v1876_v47 = vpack.c.bf16 %v4943_v44, %v4943_v44 }
 0x8e3   : > { %v3309_v49 = vpop.f32.mrb[29].mxu0  ;;  %v1981_v50 = vsel %vm1541_vm4, %v1972_v48, -inf }
 0x8e4   : > { %1982 = vmax.xlane.f32.xlu1 %v1981_v50  ;;  %v1975_v53 = vpop.f32.mrb[30].mxu0 }
 0x8e5   : > { %v3310_v54 = vpop.f32.mrb[31].mxu0 }
 0x8e6   : > { %v1922_v55 = vpop.f32.mrb[16].mxu1 }
 0x8e7   : > { %v3303_v56 = vpop.f32.mrb[17].mxu1  ;;  %v1978_v57 = vsel %vm1541_vm4, %v1922_v55, -inf }
 0x8e8   : > { %1979 = vmax.xlane.f32.xlu0 %v1978_v57  ;;  %v1925_v60 = vpop.f32.mrb[18].mxu1 }
 0x8e9   : > { %v3304_v61 = vpop.f32.mrb[19].mxu1 }
 0x8f5   : > { %2048 = vrot.lane.b32.xlu1 %v4867_v14, %s4106_s24 }
 0x8f9   : > { %2098 = vrot.lane.b32.xlu1 %v4843_v59, %s4107_s23 }
 0x8fd   : > { %2148 = vrot.lane.b32.xlu1 %v4841_v58, %s4107_s23 }
 0x901   : > { %2146 = vrot.lane.b32.xlu1 %v4853_v1, %s4107_s23 }
 0x971   : > { %v1983_v62 = vpop.xlane.xlu1 %1982 }
 0x972   : > { %v1985_v63 = vsub.f32 %v1972_v48, %v1983_v62  ;;  %v1877_v48 = vpack.c.bf16 %v4941_v40, %v4941_v40 }
 0x974   : > { %v1988_v0 = vmul.f32 1.442695, %v1985_v63 }
 0x975   : > { %v2049_v5 = vpop.permute.xlu1 %2048  ;;  %v1980_v6 = vpop.xlane.xlu0 %1979 }
 0x976   : > { %3588 = vpow2.f32 %v1988_v0  ;;  %v1984_v7 = vsub.f32 %v1922_v55, %v1980_v6  ;;  %3318 = vmatpush3.bf16.msra.mxu0 %v2049_v5 }
 0x977   : > { %3329 = vmatprep.subr.bf16.mxu0 %v4103_v18 }
 0x978   : > { %v1986_v8 = vmul.f32 1.442695, %v1984_v7 }
 0x979   : > { %v2099_v12 = vpop.permute.xlu1 %2098 }
 0x97a   : > { %3590 = vpow2.f32 %v1986_v8  ;;  %v2104_v24 = vsel %vm1448_vm3, %v2099_v12, 0 }
 0x97d   : > { %v2149_v19 = vpop.permute.xlu1 %2148 }
 0x97e   : > { %v2154_v22 = vsel %vm1448_vm3, %v2149_v19, 0 }
 0x980   : > { %v3589_v9 = vpop.eup %3588 }
 0x981   : > { %v1993_v59 = vsel %vm1541_vm4, %v3589_v9, 0.0  ;;  %v2147_v25 = vpop.permute.xlu1 %2146 }
 0x982   : > { %1994 = vadd.xlane.f32.xlu0 %v1993_v59 }
 0x984   : > { %v3591_v58 = vpop.eup %3590 }
 0x985   : > { %v1990_v10 = vsel %vm1541_vm4, %v3591_v58, 0.0 }
 0x986   : > { %1991 = vadd.xlane.f32.xlu0 %v1990_v10  ;;  %v3557_v10 = vld [vmem:[%s4782_s7 + $0x8] sm:$0xff]  }
 0x99c   : > { %2002 = vrot.lane.b32.xlu0 %v4869_v15, %s4106_s24 }
 0x9a0   : > { %2096 = vrot.lane.b32.xlu0 %v4855_v2, %s4107_s23 }
 0xa0f   : > { %v1995_v1 = vpop.xlane.xlu0 %1994 }
 0xa10   : > { %3592 = vrcp.f32 %v1995_v1 }
 0xa13   : > { %v1992_v11 = vpop.xlane.xlu0 %1991 }
 0xa14   : > { %3594 = vrcp.f32 %v1992_v11 }
 0xa17   : > { %v2003_v13 = vpop.permute.xlu0 %2002 }
 0xa18   : > { %3312 = vmatpush3.bf16.msra.mxu1 %v2003_v13 }
 0xa19   : > { %3323 = vmatprep.subr.bf16.mxu1 %v4103_v18 }
 0xa1a   : > { %v3593_v16 = vpop.eup %3592 }
 0xa1b   : > { %v1999_v17 = vmul.f32 %v3593_v16, %v3589_v9  ;;  %v2097_v26 = vpop.permute.xlu0 %2096 }
 0xa1d   : > { %v2001_v20 = vpack.c.bf16 %v1999_v17, %v1999_v17 }
 0xa1e   : > { %v3595_v21 = vpop.eup %3594 }
 0xa1f   : > { %v1998_v23 = vmul.f32 %v3595_v21, %v3591_v58  ;;  %3320 = vmatmul.mubr.msk.bf16.vlgmr.msra.gmra.mrb[32].mxu0 %vm1541_vm4, %v2001_v20  ;;  %v3556_v58 = vld [vmem:[%s4782_s7] sm:$0xff]  }
 0xa20   : > { %3330 = vmatpush3.bf16.xpose.msra.mxu0 %v2154_v22  ;;  %3331 = vmatprep.mubr.msk.bf16.mxu0 %vm4104_vm2, %v4103_v18 }
 0xa21   : > { %v2000_v2 = vpack.c.bf16 %v1998_v23, %v1998_v23  ;;  %3341 = vmatprep.subr.bf16.mxu0 %v4103_v18 }
 0xa23   : > { %3314 = vmatmul.mubr.msk.bf16.vlgmr.msra.gmra.mrb[20].mxu1 %vm1541_vm4, %v2000_v2 }
 0xa24   : > { %3324 = vmatpush3.bf16.xpose.msra.mxu1 %v2104_v24  ;;  %3325 = vmatprep.mubr.msk.bf16.mxu1 %vm4104_vm2, %v4103_v18 }
 0xa25   : > { %3335 = vmatprep.subr.bf16.mxu1 %v4103_v18 }
 0xa27   : > { %3332 = vmatmul.mubr.msk.bf16.vlgmr.msra.gmra.mrb[36].mxu0 %vm1448_vm3, %v2147_v25 }
 0xa28   : > { %3343 = vmatprep.mubr.msk.bf16.mxu0 %vm4104_vm2, %v4103_v18 }
 0xa2b   : > { %3326 = vmatmul.mubr.msk.bf16.vlgmr.msra.gmra.mrb[24].mxu1 %vm1448_vm3, %v2097_v26  ;;  %v1653_v26 = vpack.c.bf16 %v4903_v51, %v4903_v51  ;;  %v3127_v51 = vld [vmem:[%s5300_s2] ss:$0 sm:$0xff] }
 0xa2c   : > { %3337 = vmatprep.mubr.msk.bf16.mxu1 %vm4104_vm2, %v4103_v18 }
 0xaf2   : > { %v2088_v27 = vpop.f32.mrb[32].mxu0 }
 0xaf3   : > { %v3321_v28 = vpop.f32.mrb[33].mxu0  ;;  %v2095_v49 = vpack.c.bf16 %v2088_v27, %v2088_v27  ;;  %v1652_v27 = vpack.c.bf16 %v4905_v52, %v4905_v52 }
 0xaf4   : > { %v2091_v29 = vpop.f32.mrb[34].mxu0 }
 0xaf5   : > { %v3322_v30 = vpop.f32.mrb[35].mxu0 }
 0xaf6   : > { %v2042_v31 = vpop.f32.mrb[20].mxu1 }
 0xaf7   : > { %v3315_v32 = vpop.f32.mrb[21].mxu1  ;;  %v2094_v62 = vpack.c.bf16 %v2042_v31, %v2042_v31 }
 0xaf8   : > { %v2045_v33 = vpop.f32.mrb[22].mxu1 }
 0xaf9   : > { %v3316_v34 = vpop.f32.mrb[23].mxu1 }
 0xafa   : > { %v2190_v35 = vpop.f32.mrb[36].mxu0 }
 0xafb   : > { %v3333_v36 = vpop.f32.mrb[37].mxu0  ;;  %v2199_v37 = vsel %vm1541_vm4, %v2190_v35, -inf }
 0xafc   : > { %2200 = vmax.xlane.f32.xlu1 %v2199_v37  ;;  %v2193_v38 = vpop.f32.mrb[38].mxu0 }
 0xafd   : > { %v3334_v39 = vpop.f32.mrb[39].mxu0 }
 0xafe   : > { %v2140_v41 = vpop.f32.mrb[24].mxu1 }
 0xaff   : > { %v3327_v42 = vpop.f32.mrb[25].mxu1  ;;  %v2196_v43 = vsel %vm1541_vm4, %v2140_v41, -inf }
 0xb00   : > { %2197 = vmax.xlane.f32.xlu0 %v2196_v43  ;;  %v2143_v45 = vpop.f32.mrb[26].mxu1 }
 0xb01   : > { %v3328_v46 = vpop.f32.mrb[27].mxu1 }
 0xb0d   : > { %2266 = vrot.lane.b32.xlu1 %v4867_v14, %s4107_s23 }
 0xb11   : > { %2316 = vrot.lane.b32.xlu1 %v1876_v47, %s4108_s10 }
 0xb15   : > { %2318 = vrot.lane.b32.xlu1 %v1877_v48, %s4108_s10 }
 0xb19   : > { %2324 = vrot.lane.b32.xlu1 %v2095_v49, %s4109_s18 }
 0xb89   : > { %v2201_v50 = vpop.xlane.xlu1 %2200 }
 0xb8a   : > { %v2203_v53 = vsub.f32 %v2190_v35, %v2201_v50 }
 0xb8c   : > { %v2206_v54 = vmul.f32 1.442695, %v2203_v53 }
 0xb8d   : > { %v2267_v55 = vpop.permute.xlu1 %2266  ;;  %v2198_v56 = vpop.xlane.xlu0 %2197 }
 0xb8e   : > { %3596 = vpow2.f32 %v2206_v54  ;;  %v2202_v14 = vsub.f32 %v2140_v41, %v2198_v56  ;;  %3342 = vmatpush3.bf16.msra.mxu0 %v2267_v55 }
 0xb8f   : > { %3355 = vmatprep.subr.bf16.mxu0 %v4103_v18 }
 0xb90   : > { %v2204_v44 = vmul.f32 1.442695, %v2202_v14 }
 0xb91   : > { %v2317_v23 = vpop.permute.xlu1 %2316 }
 0xb92   : > { %3598 = vpow2.f32 %v2204_v44  ;;  %v2334_v29 = vsel %vm1448_vm3, %v1652_v27, %v2317_v23  ;;  %v3558_v44 = vld [vmem:[%s4740_s11] sm:$0xff]  }
 0xb93   : > { %v3134_v23 = vld [vmem:[%s950_s9] ss:$0 sm:$0xff] }
 0xb95   : > { %v2319_v2 = vpop.permute.xlu1 %2318 }
 0xb96   : > { %v2337_v30 = vsel %vm1448_vm3, %v1653_v26, %v2319_v2 }
 0xb98   : > { %v3597_v57 = vpop.eup %3596 }
 0xb99   : > { %v2211_v40 = vsel %vm1541_vm4, %v3597_v57, 0.0  ;;  %v2325_v24 = vpop.permute.xlu1 %2324 }
 0xb9a   : > { %2212 = vadd.xlane.f32.xlu0 %v2211_v40  ;;  %v2341_v31 = vsel %vm1541_vm4, %v2337_v30, %v2325_v24 }
 0xb9c   : > { %v3599_v60 = vpop.eup %3598 }
 0xb9d   : > { %v2208_v61 = vsel %vm1541_vm4, %v3599_v60, 0.0 }
 0xb9e   : > { %2209 = vadd.xlane.f32.xlu0 %v2208_v61 }
 0xbb4   : > { %2220 = vrot.lane.b32.xlu0 %v4869_v15, %s4107_s23 }
 0xbb8   : > { %2322 = vrot.lane.b32.xlu0 %v2094_v62, %s4109_s18 }
 0xc27   : > { %v2213_v63 = vpop.xlane.xlu0 %2212 }
 0xc28   : > { %3600 = vrcp.f32 %v2213_v63 }
 0xc2b   : > { %v2210_v0 = vpop.xlane.xlu0 %2209 }
 0xc2c   : > { %3602 = vrcp.f32 %v2210_v0 }
 0xc2f   : > { %v2221_v5 = vpop.permute.xlu0 %2220 }
 0xc30   : > { %3336 = vmatpush3.bf16.msra.mxu1 %v2221_v5 }
 0xc31   : > { %3347 = vmatprep.subr.bf16.mxu1 %v4103_v18 }
 0xc32   : > { %v3601_v6 = vpop.eup %3600 }
 0xc33   : > { %v2217_v7 = vmul.f32 %v3601_v6, %v3597_v57  ;;  %v2323_v25 = vpop.permute.xlu0 %2322  ;;  %v3559_v57 = vld [vmem:[%s4740_s11 + $0x8] sm:$0xff]   ;;  %s5302_s11 = scalar_lea.vmem [#allocation17], %s4713_s26 }
 0xc34   : > { %v2339_v32 = vsel %vm1541_vm4, %v2334_v29, %v2323_v25 }
 0xc35   : > { %v2219_v8 = vpack.c.bf16 %v2217_v7, %v2217_v7  ;;  %v3132_v7 = vld [vmem:[%s5301_s14] ss:$0 sm:$0xff] }
 0xc36   : > { %v3603_v9 = vpop.eup %3602 }
 0xc37   : > { %v2216_v59 = vmul.f32 %v3603_v9, %v3599_v60  ;;  %3344 = vmatmul.mubr.msk.bf16.vlgmr.msra.gmra.mrb[40].mxu0 %vm1541_vm4, %v2219_v8 }
 0xc38   : > { %3359 = vmatprep.mubr.msk.bf16.mxu0 %vm4104_vm2, %v4103_v18  ;;  %3356 = vmatpush3.bf16.msra.mxu0 %v3558_v44 }
 0xc39   : > { %v2218_v15 = vpack.c.bf16 %v2216_v59, %v2216_v59  ;;  %3357 = vmatprep.subr.bf16.mxu0 %v4103_v18 }
 0xc3b   : > { %3338 = vmatmul.mubr.msk.bf16.vlgmr.msra.gmra.mrb[28].mxu1 %vm1541_vm4, %v2218_v15  ;;  %v3133_v15 = vld [vmem:[%s5302_s11] ss:$0 sm:$0xff] }
 0xc3c   : > { %3351 = vmatprep.mubr.msk.bf16.mxu1 %vm4104_vm2, %v4103_v18  ;;  %3348 = vmatpush3.bf16.msra.mxu1 %v3556_v58 }
 0xc3d   : > { %3349 = vmatprep.subr.bf16.mxu1 %v4103_v18  ;;  %3358 = vmatpush3.bf16.msra.mxu0 %v3559_v57 }
 0xc40   : > { %3350 = vmatpush3.bf16.msra.mxu1 %v3557_v10 }
 0xc41   : > { %3363 = vmatprep.subr.bf16.mxu1 %v4103_v18 }
 0xd0a   : > { %v2306_v1 = vpop.f32.mrb[40].mxu0 }
 0xd0b   : > { %v2313_v11 = vpack.c.bf16 %v2306_v1, %v2306_v1  ;;  %v3345_v12 = vpop.f32.mrb[41].mxu0 }
 0xd0c   : > { %v2309_v13 = vpop.f32.mrb[42].mxu0  ;;  %v3560_v12 = vld [vmem:[%s4787_s8] sm:$0xff]  }
 0xd0d   : > { %2330 = vrot.lane.b32.xlu1 %v2313_v11, %s4110_s27  ;;  %v3346_v16 = vpop.f32.mrb[43].mxu0  ;;  %v3561_v13 = vld [vmem:[%s4787_s8 + $0x8] sm:$0xff]  }
 0xd0e   : > { %v2260_v17 = vpop.f32.mrb[28].mxu1  ;;  %v3562_v16 = vld [vmem:[%s4787_s8 + $0x10] sm:$0xff]  }
 0xd0f   : > { %v2312_v19 = vpack.c.bf16 %v2260_v17, %v2260_v17  ;;  %v3339_v20 = vpop.f32.mrb[29].mxu1  ;;  %v3563_v17 = vld [vmem:[%s4787_s8 + $0x18] sm:$0xff]  }
 0xd10   : > { %v2263_v21 = vpop.f32.mrb[30].mxu1  ;;  %v3565_v20 = vld [vmem:[%s4787_s8 + $0x28] sm:$0xff]  }
 0xd11   : > { %2328 = vrot.lane.b32.xlu0 %v2312_v19, %s4110_s27  ;;  %v3340_v22 = vpop.f32.mrb[31].mxu1  ;;  %v3564_v19 = vld [vmem:[%s4787_s8 + $0x20] sm:$0xff]   ;;  %v3566_v21 = vld [vmem:[%s4787_s8 + $0x30] sm:$0xff]  }
 0xd12   : > { %v3567_v22 = vld [vmem:[%s4787_s8 + $0x38] sm:$0xff]  }
 0xd7f   : > { %v2331_v28 = vpop.permute.xlu1 %2330 }
 0xd80   : > { %v2346_v34 = vsel %vm2342_vm5, %v2341_v31, %v2331_v28 }
 0xd83   : > { %v2329_v33 = vpop.permute.xlu0 %2328 }
 0xd84   : > { %v2344_v35 = vsel %vm2342_vm5, %v2339_v32, %v2329_v33 }
 0xd85   : > { %v3128_v36 = vcombine.low %v2344_v35, %v2346_v34 }
 0xd87   : > { %3352 = vmatmul.mubr.msk.bf16.vlgmr.msra.gmra.mrb[32].mxu1 %vm1146_vm1, %v3128_v36 }
 0xd88   : > { %3379 = vmatprep.mubr.msk.bf16.mxu1 %vm4104_vm2, %v4103_v18  ;;  %3364 = vmatpush3.bf16.msra.mxu1 %v3560_v12 }
 0xd89   : > { %3365 = vmatprep.subr.bf16.mxu1 %v4103_v18 }
 0xd8c   : > { %3366 = vmatpush3.bf16.msra.mxu1 %v3561_v13 }
 0xd8d   : > { %3367 = vmatprep.subr.bf16.mxu1 %v4103_v18 }
 0xd90   : > { %3368 = vmatpush3.bf16.msra.mxu1 %v3562_v16 }
 0xd91   : > { %3369 = vmatprep.subr.bf16.mxu1 %v4103_v18 }
 0xd94   : > { %3370 = vmatpush3.bf16.msra.mxu1 %v3563_v17 }
 0xd95   : > { %3371 = vmatprep.subr.bf16.mxu1 %v4103_v18 }
 0xd98   : > { %3372 = vmatpush3.bf16.msra.mxu1 %v3564_v19 }
 0xd99   : > { %3373 = vmatprep.subr.bf16.mxu1 %v4103_v18 }
 0xd9c   : > { %3374 = vmatpush3.bf16.msra.mxu1 %v3565_v20 }
 0xd9d   : > { %3375 = vmatprep.subr.bf16.mxu1 %v4103_v18 }
 0xda0   : > { %3376 = vmatpush3.bf16.msra.mxu1 %v3566_v21 }
 0xda1   : > { %3377 = vmatprep.subr.bf16.mxu1 %v4103_v18 }
 0xda4   : > { %3378 = vmatpush3.bf16.msra.mxu1 %v3567_v22 }
 0xe5a   : > { %v2412_v52 = vpop.f32.mrb[32].mxu1 }
 0xe5b   : > { %v2413_v37 = vadd.f32 %v3127_v51, %v2412_v52  ;;  %v3353_v38 = vpop.f32.mrb[33].mxu1 }
 0xe5c   : > { %v2415_v39 = vpop.f32.mrb[34].mxu1 }
 0xe5d   : > { %v5019_v41 = vadd.f32 %v2413_v37, %v4798_v3  ;;  %v2416_v42 = vadd.f32 %v3127_v51, %v2415_v39  ;;  %v3354_v43 = vpop.f32.mrb[35].mxu1  ;;  %v3140_v39 = vld [vmem:[%s1128_s16] ss:$0 sm:$0xff] }
 0xe5f   : > { %v5022_v45 = vadd.f32 %v2416_v42, %v4800_v4  ;;  %v2423_v46 = vsel %vm1146_vm1, %v5019_v41, 0.0 }
 0xe60   : > { %2424 = vadd.xlane.f32.xlu0 %v2423_v46 }
 0xe61   : > { %v2426_v47 = vsel %vm1146_vm1, %v5022_v45, 0.0 }
 0xe62   : > { %2427 = vadd.xlane.f32.xlu1 %v2426_v47 }
 0xeed   : > { %v2425_v48 = vpop.xlane.xlu0 %2424 }
 0xeee   : > { %v2429_v49 = vmul.f32 0.03125, %v2425_v48 }
 0xeef   : > { %v2428_v50 = vpop.xlane.xlu1 %2427 }
 0xef0   : > { %v2431_v3 = vsub.f32 %v5019_v41, %v2429_v49  ;;  %v2430_v53 = vmul.f32 0.03125, %v2428_v50 }
 0xef2   : > { %v2432_v54 = vsub.f32 %v5022_v45, %v2430_v53  ;;  %v2433_v4 = vmul.f32 %v2431_v3, %v2431_v3 }
 0xef4   : > { %v2435_v55 = vsel %vm1146_vm1, %v2433_v4, 0.0  ;;  %v2434_v56 = vmul.f32 %v2432_v54, %v2432_v54 }
 0xef5   : > { %2436 = vadd.xlane.f32.xlu0 %v2435_v55 }
 0xef6   : > { %v2438_v14 = vsel %vm1146_vm1, %v2434_v56, 0.0 }
 0xef9   : > { %2439 = vadd.xlane.f32.xlu0 %v2438_v14 }
 0xf82   : > { %v2437_v40 = vpop.xlane.xlu0 %2436 }
 0xf83   : > { %v2441_v60 = vmul.f32 0.03125, %v2437_v40 }
 0xf85   : > { %v2443_v61 = vadd.f32 1e-05, %v2441_v60 }
 0xf86   : > { %v2440_v62 = vpop.xlane.xlu0 %2439 }
 0xf87   : > { %3604 = vrsqrt.f32 %v2443_v61  ;;  %v2442_v63 = vmul.f32 0.03125, %v2440_v62 }
 0xf89   : > { %v2444_v0 = vadd.f32 1e-05, %v2442_v63 }
 0xf8b   : > { %3606 = vrsqrt.f32 %v2444_v0 }
 0xf91   : > { %v3605_v5 = vpop.eup %3604 }
 0xf92   : > { %v2447_v6 = vmul.f32 %v3605_v5, %v2431_v3 }
 0xf94   : > { %v2455_v9 = vmul.f32 %v3132_v7, %v2447_v6 }
 0xf95   : > { %v3607_v8 = vpop.eup %3606 }
 0xf96   : > { %v2448_v59 = vmul.f32 %v3607_v8, %v2432_v54  ;;  %v2463_v10 = vadd.f32 %v3133_v15, %v2455_v9 }
 0xf98   : > { %v2456_v58 = vmul.f32 %v3132_v7, %v2448_v59 }
 0xf9a   : > { %v2464_v1 = vadd.f32 %v3133_v15, %v2456_v58 }
 0xf9c   : > { %v2465_v11 = vpack.c.bf16 %v2464_v1, %v2463_v10 }
 0xf9e   : > { %3360 = vmatmul.mubr.msk.bf16.vlgmr.msra.gmra.mrb[44].mxu0 %vm1146_vm1, %v2465_v11 }
0x1071   : > { %v2526_v2 = vpop.f32.mrb[44].mxu0 }
0x1072   : > { %v2527_v24 = vadd.f32 %v3134_v23, %v2526_v2  ;;  %v3361_v25 = vpop.f32.mrb[45].mxu0 }
0x1073   : > { %v2529_v26 = vpop.f32.mrb[46].mxu0 }
0x1074   : > { %v3138_v27 = vmul.f32 -1.702, %v2527_v24  ;;  %v2530_v28 = vadd.f32 %v3134_v23, %v2529_v26  ;;  %v3362_v29 = vpop.f32.mrb[47].mxu0 }
0x1076   : > { %v2537_v30 = vmul.f32 1.442695, %v3138_v27  ;;  %v3139_v31 = vmul.f32 -1.702, %v2530_v28 }
0x1078   : > { %3608 = vpow2.f32 %v2537_v30  ;;  %v2539_v32 = vmul.f32 1.442695, %v3139_v31 }
0x107a   : > { %3610 = vpow2.f32 %v2539_v32 }
0x1082   : > { %v3609_v33 = vpop.eup %3608 }
0x1083   : > { %v2541_v34 = vadd.f32 1.0, %v3609_v33 }
0x1084   : > { %v3611_v18 = vpop.eup %3610 }
0x1085   : > { %3612 = vrcp.f32 %v2541_v34  ;;  %v2542_v35 = vadd.f32 1.0, %v3611_v18 }
0x1087   : > { %3614 = vrcp.f32 %v2542_v35 }
0x108f   : > { %v3613_v36 = vpop.eup %3612 }
0x1090   : > { %v2547_v52 = vmul.f32 %v3613_v36, %v2527_v24 }
0x1091   : > { %v3615_v51 = vpop.eup %3614 }
0x1092   : > { %v2548_v37 = vmul.f32 %v3615_v51, %v2530_v28 }
0x1094   : > { %v2549_v38 = vpack.c.bf16 %v2548_v37, %v2547_v52 }
0x1096   : > { %3380 = vmatmul.mubr.bf16.vlgmr.msra.gmra.mrb[36].mxu1 %v2549_v38 }
0x1169   : > { %v2655_v42 = vpop.f32.mrb[36].mxu1 }
0x116a   : > { %v2656_v43 = vadd.f32 %v3140_v39, %v2655_v42  ;;  %v3381_v46 = vpop.f32.mrb[37].mxu1  ;;  %2669 = sbr.rel (%p3149_p5) target bundleno = 4465 (0x1171), region = 148 }
0x116b   : > { %v2658_v47 = vpop.f32.mrb[38].mxu1 }
0x116c   : > { %v2662_v48 = vadd.f32 %v2656_v43, %v5019_v41  ;;  %v2659_v49 = vadd.f32 %v3140_v39, %v2658_v47  ;;  %v3382_v50 = vpop.f32.mrb[39].mxu1 }
0x116e   : > { %2664 = vst.msk [vmem:[#allocation2] sm:$0xff] %vm1146_vm1, %v2662_v48  ;;  %v2663_v3 = vadd.f32 %v2659_v49, %v5022_v45  ;;  %2670 = vst.msk [vmem:[%s4794_s19] sm:$0xff] (!%p3149_p5), %vm1146_vm1, %v2662_v48 }
0x1170   : > { %2665 = vst.msk [vmem:[#allocation2 + $0x8] sm:$0xff] %vm1146_vm1, %v2663_v3  ;;  %2671 = vst.msk [vmem:[%s4794_s19 + $0x8] sm:$0xff] (!%p3149_p5), %vm1146_vm1, %v2663_v3 }
0x1171 PF: > { %s5305_s13 = sld [smem:[#allocation35_spill]]  ;;  %s5306_s25 = sld [smem:[#allocation44_spill]] }
0x1172   : > { %s5307_s4 = sld [smem:[#allocation65_spill]]  ;;  %s2686_s5 = sshll.u32 %s4794_s19, 4  ;;  %s5078_s5 = int_to_ptr.vmem [resolvable:$true] %s2686_s5 }
0x1173   : > { %s2673_s1 = scalar_lea.sflag [#allocation5], %s4701_s29  ;;  %s3946_s16 = scalar_lea.vmem %s5078_s5, 256 }
0x1174   : > { %p3947_p4 = scmp.ne.s32.totalorder %s5078_s5, %s3946_s16  ;;  %s4111_s9 = smov [#allocation21]  }
0x1175   : > { %s3950_s21 = sshll.u32 %s4111_s9, 4  ;;  %s3951_s21 = int_to_ptr.vmem [resolvable:$false] %s3950_s21 }
0x1176   : > { %s3952_s3 = scalar_lea.vmem %s3951_s21, 512  ;;  %p3953_p6 = scmp.lt.s32.totalorder %s5078_s5, %s3951_s21 }
0x1177   : > { %s3164_s12 = sshll.u32 %s5305_s13, 8  ;;  %p5308_p11 = scmp.ne.s32.totalorder %s5306_s25, 0 }
0x1178   : > { %s5075_s8 = scalar_lea.hbm %s5307_s4, %s3164_s12  ;;  %p3954_p9 = scmp.lt.s32.totalorder %s3952_s3, %s3946_s16 }
0x1179   : > { %p3948_p2 = pnand %p3947_p4, %p5308_p11 }
0x117a   : > { %p3955_p10 = por %p3954_p9, %p3953_p6 }
0x117b   : > { %p3949_p7 = pneg %p3948_p2 }
0x117d   : > { %p3956_p1 = pnand %p3955_p10, %p3949_p7 }
0x117f   : > { %3959 = shalt.err (!%p3956_p1)
}
0x1180   : > { %s3960_s19 = scalar_lea.hbm %s5075_s8, 256  ;;  %s3964_s0 = scalar_lea.hbm %s5307_s4, 512 }
0x1181   : > { %p3961_p8 = scmp.ne.s32.totalorder %s5075_s8, %s3960_s19  ;;  %p3965_p13 = scmp.lt.u32.totalorder %s5075_s8, %s5307_s4 }
0x1182   : > { %p3966_p0 = scmp.lt.u32.totalorder %s3964_s0, %s3960_s19  ;;  %p3968_p4 = scmp.lt.u32.totalorder %s3960_s19, %s5075_s8 }
0x1183   : > { %p3962_p12 = pnand %p3961_p8, %p5308_p11 }
0x1184   : > { %p3967_p5 = por %p3966_p0, %p3965_p13 }
0x1185   : > { %p3963_p3 = pneg %p3962_p12 }
0x1186   : > { %p3969_p2 = por %p3968_p4, %p3967_p5 }
0x1188   : > { %p3970_p7 = pnand %p3969_p2, %p3963_p3 }
0x118a   : > { %3973 = shalt.err (!%p3970_p7)
}
0x118b   : > { %s4112_s23 = smov 128  }
0x118c   : > { %3405 = dma.vmem_to_hbm [thread:$0]  (%p5308_p11), %s5078_s5, 256, %s5075_s8, %s2673_s1, %s4112_s23, %s4112_s23, %s4108_s10  }
0x118d PF: > { %s5309_s18 = sld [smem:[#allocation38_spill]]  ;;  %s5310_s27 = sld [smem:[#allocation31_spill]] }
0x118e   : > { %s5311_s2 = sld [smem:[#allocation45_spill]] }
0x1193   : > { %p3446_p6 = scmp.ge.s32.totalorder %s5309_s18, 2  ;;  %s2701_s14 = sand.u32 1, %s5310_s27  }
0x1194   : > { %p5312_p9 = scmp.ne.s32.totalorder %s5311_s2, 0  ;;  %s2702_s11 = scalar_lea.sflag [#allocation5], %s2701_s14 }
0x1196   : > { %p3442_p10 = pnand %p3446_p6, %p5312_p9 }
0x1198   : > { %4043 = dma.done.wait (!%p3442_p10), %s2702_s11, 256  }
0x1199   : > { %4045 = vsyncadd (!%p3442_p10), %s2702_s11, 4294967040  ;;  %s50_s3 = sadd.s32 1, %s5309_s18   ;;  %s5313_s0 = sld [smem:[#allocation29_spill]] }
0x119a   : > { %p47_p1 = scmp.ge.s32.totalorder %s50_s3, 6   ;;  %s5314_s30 = sld [smem:[#allocation30_spill]] }
0x119b   : > { %s5315_s20 = sld [smem:[#allocation42_spill]]  ;;  %s5316_s21 = sld [smem:[#allocation32_spill]] }
0x119c   : > { %s5317_s1 = sld [smem:[#allocation33_spill]]  ;;  %s5318_s22 = sld [smem:[#allocation43_spill]] }
0x119d   : > { %s5319_s2 = sld [smem:[#allocation36_spill]]  ;;  %s5320_s23 = sld [smem:[#allocation37_spill]] }
0x119e   : > { %s5321_s24 = sld [smem:[#allocation40_spill]]  ;;  %s5322_s25 = sld [smem:[#allocation41_spill]] }
0x119f   :  { %49 = sbr.rel (!%p47_p1) target bundleno = 40 (0x28), region = 293 }
0x11a6   :  { %2707 = vsyncpa [#allocation4], 1 }
0x11a7   :  { %2709 = vsyncpa [#allocation4 + $0x1], 1 }
0x11a8   :  { %2710 = vsyncpa [#allocation7], 1 }
0x11a9   :  { %2712 = vsyncpa [#allocation7 + $0x1], 1 }
0x11aa   :  { %2713 = vsyncpa [#allocation10], 1 }
0x11ab   :  { %2715 = vsyncpa [#allocation10 + $0x1], 1 }
0x11ac   :  { %2716 = vsyncpa [#allocation13], 1 }
0x11ad   :  { %2718 = vsyncpa [#allocation13 + $0x1], 1 }
0x11ae   :  { %2719 = vsyncpa [#allocation16], 1 }
0x11af   :  { %2721 = vsyncpa [#allocation16 + $0x1], 1 }
0x11b0   :  { %2722 = vsyncpa [#allocation19], 1 }
0x11b1   :  { %2724 = vsyncpa [#allocation19 + $0x1], 1 }
0x11b2   :  { %2725 = vsyncpa [#allocation5], 1 }
0x11b3   :  { %2727 = vsyncpa [#allocation5 + $0x1], 1 }

</bundles_post_ra>
